<compile_context>
chip_gen: v6e
topology: v6e:2x2x1
jax: 0.10.0
libtpu: 0.0.40
codegen_flags: <defaults>
</compile_context>

<pallas_src>
import jax
import jax.numpy as jnp
from jax import lax
from jax.experimental import pallas as pl
from jax.experimental.pallas import tpu as pltpu

N_RK4_STEPS = 8   # fixed-step RK4 substitute for dopri5
LANE = 128        # pad hidden width to a full lane multiple (lane-dense vregs/stores)


def _odernn_kernel(xproj_ref, bias_ref, whh_ref, wode_ref, out_ref):
    """Whole ODE-RNN recurrence in a single kernel invocation.

    xproj_ref : (T, B, HP)   precomputed x[i] @ W_ih + b_rnn (zero-padded to HP lanes)
    bias_ref  : (T, B, HP)   precomputed b_ode + t[i] * b_t
    whh_ref   : (HP, HP)     RNN recurrent weights (zero-padded)
    wode_ref  : (HP, HP)     ODE weights (zero-padded)
    out_ref   : (T+1, B, HP) h_ode[0..T]
    """
    T, B, HP = xproj_ref.shape
    dt = 1.0 / N_RK4_STEPS

    # h_ode[0] = zeros (ic is None); lane-dense (B, 128) store
    out_ref[0, :, :] = jnp.zeros((B, HP), jnp.float32)

    def step(i, h):
        # ---- RNN cell: h_rnn[i] = tanh(h_ode[i] @ W_hh + (x[i] @ W_ih + b_rnn)) ----
        h = jnp.tanh(
            jnp.dot(h, whh_ref[...], preferred_element_type=jnp.float32)
            + xproj_ref[i])

        # per-step ODE bias (ode.update(t[i])) — precomputed in the wrapper
        bias = bias_ref[i]

        def f(hh):
            return jnp.tanh(
                jnp.dot(hh, wode_ref[...], preferred_element_type=jnp.float32)
                + bias)

        # ---- fixed-step RK4 integration of h over s in [0, 1] ----
        # (static 8x unroll inside the fori_loop body: ~33 matmuls per time step)
        for _ in range(N_RK4_STEPS):
            k1 = f(h)
            k2 = f(h + (0.5 * dt) * k1)
            k3 = f(h + (0.5 * dt) * k2)
            k4 = f(h + dt * k3)
            h = h + (dt / 6.0) * (k1 + 2.0 * k2 + 2.0 * k3 + k4)

        out_ref[i + 1, :, :] = h                # lane-dense (B, 128) store
        return h

    h0 = jnp.zeros((B, HP), jnp.float32)
    lax.fori_loop(0, T, step, h0)


def _ode_rnn_forward_padded(t, x, params):
    """t: [T, B], x: [T, B, F] -> h_ode padded to the lane width: [T+1, B, HP]."""
    T, B = t.shape
    F = x.shape[-1]
    H = params["W_hh"].shape[0]
    HP = ((H + LANE - 1) // LANE) * LANE        # lane-dense padded hidden width

    f32 = jnp.float32
    pad_c = lambda a: jnp.pad(a.astype(f32), ((0, 0), (0, HP - a.shape[-1])))
    pad_rc = lambda a: jnp.pad(a.astype(f32),
                               ((0, HP - a.shape[0]), (0, HP - a.shape[1])))

    w_ih = pad_c(params["W_ih"])                # (F, HP)
    b_rnn = pad_c(params["b_rnn"])              # (1, HP)
    w_hh = pad_rc(params["W_hh"])               # (HP, HP)
    w_ode = pad_rc(params["W_ode"])             # (HP, HP)
    b_ode = pad_c(params["b_ode"])              # (1, HP)
    b_t = pad_c(params["b_t"])                  # (1, HP)

    x = x.astype(f32)
    t = t.astype(f32)

    # Input projection for all time steps at once: one batched MXU-friendly matmul
    # outside the serial recurrence instead of T tiny ones inside it.
    x_proj = (jnp.dot(x.reshape(T * B, F), w_ih,
                      preferred_element_type=f32) + b_rnn).reshape(T, B, HP)

    # Per-step ODE bias for all time steps at once (one fused XLA op).
    bias_all = b_ode[None] + t[:, :, None] * b_t[None]      # (T, B, HP)

    # cost estimate: 1 RNN matmul + 4*N_RK4 ODE matmuls per time step.
    n_mm = T * (4 * N_RK4_STEPS + 1)
    cost = pl.CostEstimate(
        flops=2 * n_mm * B * HP * HP,
        transcendentals=n_mm * B * HP,
        bytes_accessed=4 * (2 * T * B * HP + 2 * HP * HP + (T + 1) * B * HP),
    )

    vmem = pl.BlockSpec(memory_space=pltpu.MemorySpace.VMEM)
    out_padded = pl.pallas_call(
        _odernn_kernel,
        out_shape=jax.ShapeDtypeStruct((T + 1, B, HP), f32),
        in_specs=[vmem] * 4,
        out_specs=vmem,
        cost_estimate=cost,
    )(x_proj, bias_all, w_hh, w_ode)

    return out_padded


def ode_rnn_forward(t, x, params):
    """t: [T, B] float32, x: [T, B, F] float32 -> (h_ode,) with h_ode [T+1, B, H]."""
    H = params["W_hh"].shape[0]
    out_padded = _ode_rnn_forward_padded(t, x, params)
    # drop the zero lane-padding (zero initial row already written in-kernel)
    return (out_padded[:, :, :H],)


def _ode_rnn_reference(t, x, params):
    """Pure-JAX reference with identical math (for verification)."""
    T, B = t.shape
    H = params["W_hh"].shape[0]

    def rnn_cell(h, xi):
        return jnp.tanh(h @ params["W_hh"] + xi @ params["W_ih"] + params["b_rnn"])

    def f(h, ti):
        return jnp.tanh(h @ params["W_ode"] + params["b_ode"]
                        + ti[:, None] * params["b_t"])

    def step(h_ode, inp):
        xi, ti = inp
        h = rnn_cell(h_ode, xi)
        dt = 1.0 / N_RK4_STEPS
        for _ in range(N_RK4_STEPS):
            k1 = f(h, ti)
            k2 = f(h + 0.5 * dt * k1, ti)
            k3 = f(h + 0.5 * dt * k2, ti)
            k4 = f(h + dt * k3, ti)
            h = h + (dt / 6.0) * (k1 + 2.0 * k2 + 2.0 * k3 + k4)
        return h, h

    h0 = jnp.zeros((B, H), jnp.float32)
    _, hs = jax.lax.scan(step, h0, (x, t))
    return jnp.concatenate([h0[None], hs], axis=0)


def make_params(key, n_in, n_hid):
    ks = jax.random.split(key, 6)
    s = lambda k, shape, scale: (scale * jax.random.normal(k, shape)).astype(jnp.float32)
    return {
        "W_ih": s(ks[0], (n_in, n_hid), 0.3),
        "W_hh": s(ks[1], (n_hid, n_hid), 0.3),
        "b_rnn": s(ks[2], (1, n_hid), 0.1),
        "W_ode": s(ks[3], (n_hid, n_hid), 0.3),
        "b_ode": s(ks[4], (1, n_hid), 0.1),
        "b_t": s(ks[5], (1, n_hid), 0.1),
    }


if __name__ == "__main__":
    T, B, F, H = 8, 8, 16, 32

    key = jax.random.PRNGKey(0)
    k_x, k_t, k_p = jax.random.split(key, 3)

    x = jax.random.normal(k_x, (T, B, F), dtype=jnp.float32)
    # monotone per-batch observation times in (0, 1]
    t = (jnp.arange(1, T + 1, dtype=jnp.float32)[:, None] / T
         + 0.01 * jax.random.uniform(k_t, (T, B), dtype=jnp.float32))

    params = make_params(k_p, F, H)

    (h_ode,) = jax.jit(ode_rnn_forward)(t, x, params)
    h_ode = jax.block_until_ready(h_ode)
    assert h_ode.shape == (T + 1, B, H), h_ode.shape

    # Guard the lane-padding argument: padded columns must stay exactly zero
    # (requires zero-padded weight rows/cols + biases and tanh(0) == 0).
    out_padded = jax.block_until_ready(jax.jit(_ode_rnn_forward_padded)(t, x, params))
    assert bool(jnp.all(out_padded[:, :, H:] == 0.0)), "lane padding leaked into real lanes"

    ref = _ode_rnn_reference(t, x, params)
    assert jnp.allclose(h_ode, ref, atol=1e-5, rtol=1e-5), \
        float(jnp.max(jnp.abs(h_ode - ref)))

    print("KERNEL_OK")
</pallas_src>

<mosaic_0001>
module attributes {stable_mosaic.version = 11 : i64} {
  func.func @_odernn_kernel(%arg0: memref<8x8x128xf32, #tpu.memory_space<vmem>>, %arg1: memref<8x8x128xf32, #tpu.memory_space<vmem>>, %arg2: memref<128x128xf32, #tpu.memory_space<vmem>>, %arg3: memref<128x128xf32, #tpu.memory_space<vmem>>, %arg4: memref<9x8x128xf32, #tpu.memory_space<vmem>>) attributes {dimension_semantics = [], scalar_prefetch = 0 : i64, scratch_operands = 0 : i64, tpu.core_type = #tpu.core_type<tc>} {
    %cst = arith.constant 0.000000e+00 : f32
    %0 = vector.broadcast %cst : f32 to vector<8x128xf32>
    %c0 = arith.constant 0 : index
    %c0_0 = arith.constant 0 : index
    %c0_1 = arith.constant 0 : index
    %1 = vector.load %arg4[%c0, %c0_0, %c0_1] : memref<9x8x128xf32, #tpu.memory_space<vmem>>, vector<1x8x128xf32>
    %2 = vector.shape_cast %1 : vector<1x8x128xf32> to vector<8x128xf32>
    %3 = vector.shape_cast %0 : vector<8x128xf32> to vector<1x8x128xf32>
    tpu.vector_store %arg4[%c0, %c0_0, %c0_1], %3 {strides = array<i32>} : memref<9x8x128xf32, #tpu.memory_space<vmem>>, vector<1x8x128xf32>,
    %cst_2 = arith.constant 0.000000e+00 : f32
    %4 = vector.broadcast %cst_2 : f32 to vector<8x128xf32>
    %c0_i32 = arith.constant 0 : i32
    %c8_i32 = arith.constant 8 : i32
    %5 = arith.addi %c0_i32, %c8_i32 : i32
    %c1_i32 = arith.constant 1 : i32
    %6 = scf.for %arg5 = %c0_i32 to %5 step %c1_i32 iter_args(%arg6 = %4) -> (vector<8x128xf32>)  : i32 {
      %c0_4 = arith.constant 0 : index
      %c0_5 = arith.constant 0 : index
      %7 = vector.load %arg2[%c0_4, %c0_5] : memref<128x128xf32, #tpu.memory_space<vmem>>, vector<128x128xf32>
      %cst_6 = arith.constant dense<0.000000e+00> : vector<8x128xf32>
      %8 = tpu.matmul %arg6, %7, %cst_6 {dimension_numbers = #tpu.dot_dimension_numbers<[1], [0], [0], [1], [0, 0, 1, 1], [], []>} : vector<8x128xf32>, vector<128x128xf32>, vector<8x128xf32> -> vector<8x128xf32>
      %9 = arith.index_cast %arg5 : i32 to index
      %c0_7 = arith.constant 0 : index
      %c0_8 = arith.constant 0 : index
      %10 = vector.load %arg0[%9, %c0_7, %c0_8] : memref<8x8x128xf32, #tpu.memory_space<vmem>>, vector<1x8x128xf32>
      %11 = vector.shape_cast %10 : vector<1x8x128xf32> to vector<8x128xf32>
      %12 = arith.addf %8, %11 : vector<8x128xf32>
      %13 = math.tanh %12 : vector<8x128xf32>
      %14 = arith.index_cast %arg5 : i32 to index
      %c0_9 = arith.constant 0 : index
      %c0_10 = arith.constant 0 : index
      %15 = vector.load %arg1[%14, %c0_9, %c0_10] : memref<8x8x128xf32, #tpu.memory_space<vmem>>, vector<1x8x128xf32>
      %16 = vector.shape_cast %15 : vector<1x8x128xf32> to vector<8x128xf32>
      %c0_11 = arith.constant 0 : index
      %c0_12 = arith.constant 0 : index
      %17 = vector.load %arg3[%c0_11, %c0_12] : memref<128x128xf32, #tpu.memory_space<vmem>>, vector<128x128xf32>
      %cst_13 = arith.constant dense<0.000000e+00> : vector<8x128xf32>
      %18 = tpu.matmul %13, %17, %cst_13 {dimension_numbers = #tpu.dot_dimension_numbers<[1], [0], [0], [1], [0, 0, 1, 1], [], []>} : vector<8x128xf32>, vector<128x128xf32>, vector<8x128xf32> -> vector<8x128xf32>
      %19 = arith.addf %18, %16 : vector<8x128xf32>
      %20 = math.tanh %19 : vector<8x128xf32>
      %cst_14 = arith.constant 6.250000e-02 : f32
      %21 = vector.broadcast %cst_14 : f32 to vector<8x128xf32>
      %22 = arith.mulf %21, %20 : vector<8x128xf32>
      %23 = arith.addf %13, %22 : vector<8x128xf32>
      %c0_15 = arith.constant 0 : index
      %c0_16 = arith.constant 0 : index
      %24 = vector.load %arg3[%c0_15, %c0_16] : memref<128x128xf32, #tpu.memory_space<vmem>>, vector<128x128xf32>
      %cst_17 = arith.constant dense<0.000000e+00> : vector<8x128xf32>
      %25 = tpu.matmul %23, %24, %cst_17 {dimension_numbers = #tpu.dot_dimension_numbers<[1], [0], [0], [1], [0, 0, 1, 1], [], []>} : vector<8x128xf32>, vector<128x128xf32>, vector<8x128xf32> -> vector<8x128xf32>
      %26 = arith.addf %25, %16 : vector<8x128xf32>
      %27 = math.tanh %26 : vector<8x128xf32>
      %cst_18 = arith.constant 6.250000e-02 : f32
      %28 = vector.broadcast %cst_18 : f32 to vector<8x128xf32>
      %29 = arith.mulf %28, %27 : vector<8x128xf32>
      %30 = arith.addf %13, %29 : vector<8x128xf32>
      %c0_19 = arith.constant 0 : index
      %c0_20 = arith.constant 0 : index
      %31 = vector.load %arg3[%c0_19, %c0_20] : memref<128x128xf32, #tpu.memory_space<vmem>>, vector<128x128xf32>
      %cst_21 = arith.constant dense<0.000000e+00> : vector<8x128xf32>
      %32 = tpu.matmul %30, %31, %cst_21 {dimension_numbers = #tpu.dot_dimension_numbers<[1], [0], [0], [1], [0, 0, 1, 1], [], []>} : vector<8x128xf32>, vector<128x128xf32>, vector<8x128xf32> -> vector<8x128xf32>
      %33 = arith.addf %32, %16 : vector<8x128xf32>
      %34 = math.tanh %33 : vector<8x128xf32>
      %cst_22 = arith.constant 1.250000e-01 : f32
      %35 = vector.broadcast %cst_22 : f32 to vector<8x128xf32>
      %36 = arith.mulf %35, %34 : vector<8x128xf32>
      %37 = arith.addf %13, %36 : vector<8x128xf32>
      %c0_23 = arith.constant 0 : index
      %c0_24 = arith.constant 0 : index
      %38 = vector.load %arg3[%c0_23, %c0_24] : memref<128x128xf32, #tpu.memory_space<vmem>>, vector<128x128xf32>
      %cst_25 = arith.constant dense<0.000000e+00> : vector<8x128xf32>
      %39 = tpu.matmul %37, %38, %cst_25 {dimension_numbers = #tpu.dot_dimension_numbers<[1], [0], [0], [1], [0, 0, 1, 1], [], []>} : vector<8x128xf32>, vector<128x128xf32>, vector<8x128xf32> -> vector<8x128xf32>
      %40 = arith.addf %39, %16 : vector<8x128xf32>
      %41 = math.tanh %40 : vector<8x128xf32>
      %cst_26 = arith.constant 2.000000e+00 : f32
      %42 = vector.broadcast %cst_26 : f32 to vector<8x128xf32>
      %43 = arith.mulf %42, %27 : vector<8x128xf32>
      %44 = arith.addf %20, %43 : vector<8x128xf32>
      %cst_27 = arith.constant 2.000000e+00 : f32
      %45 = vector.broadcast %cst_27 : f32 to vector<8x128xf32>
      %46 = arith.mulf %45, %34 : vector<8x128xf32>
      %47 = arith.addf %44, %46 : vector<8x128xf32>
      %48 = arith.addf %47, %41 : vector<8x128xf32>
      %cst_28 = arith.constant 0.020833334 : f32
      %49 = vector.broadcast %cst_28 : f32 to vector<8x128xf32>
      %50 = arith.mulf %49, %48 : vector<8x128xf32>
      %51 = arith.addf %13, %50 : vector<8x128xf32>
      %c0_29 = arith.constant 0 : index
      %c0_30 = arith.constant 0 : index
      %52 = vector.load %arg3[%c0_29, %c0_30] : memref<128x128xf32, #tpu.memory_space<vmem>>, vector<128x128xf32>
      %cst_31 = arith.constant dense<0.000000e+00> : vector<8x128xf32>
      %53 = tpu.matmul %51, %52, %cst_31 {dimension_numbers = #tpu.dot_dimension_numbers<[1], [0], [0], [1], [0, 0, 1, 1], [], []>} : vector<8x128xf32>, vector<128x128xf32>, vector<8x128xf32> -> vector<8x128xf32>
      %54 = arith.addf %53, %16 : vector<8x128xf32>
      %55 = math.tanh %54 : vector<8x128xf32>
      %cst_32 = arith.constant 6.250000e-02 : f32
      %56 = vector.broadcast %cst_32 : f32 to vector<8x128xf32>
      %57 = arith.mulf %56, %55 : vector<8x128xf32>
      %58 = arith.addf %51, %57 : vector<8x128xf32>
      %c0_33 = arith.constant 0 : index
      %c0_34 = arith.constant 0 : index
      %59 = vector.load %arg3[%c0_33, %c0_34] : memref<128x128xf32, #tpu.memory_space<vmem>>, vector<128x128xf32>
      %cst_35 = arith.constant dense<0.000000e+00> : vector<8x128xf32>
      %60 = tpu.matmul %58, %59, %cst_35 {dimension_numbers = #tpu.dot_dimension_numbers<[1], [0], [0], [1], [0, 0, 1, 1], [], []>} : vector<8x128xf32>, vector<128x128xf32>, vector<8x128xf32> -> vector<8x128xf32>
      %61 = arith.addf %60, %16 : vector<8x128xf32>
      %62 = math.tanh %61 : vector<8x128xf32>
      %cst_36 = arith.constant 6.250000e-02 : f32
      %63 = vector.broadcast %cst_36 : f32 to vector<8x128xf32>
      %64 = arith.mulf %63, %62 : vector<8x128xf32>
      %65 = arith.addf %51, %64 : vector<8x128xf32>
      %c0_37 = arith.constant 0 : index
      %c0_38 = arith.constant 0 : index
      %66 = vector.load %arg3[%c0_37, %c0_38] : memref<128x128xf32, #tpu.memory_space<vmem>>, vector<128x128xf32>
      %cst_39 = arith.constant dense<0.000000e+00> : vector<8x128xf32>
      %67 = tpu.matmul %65, %66, %cst_39 {dimension_numbers = #tpu.dot_dimension_numbers<[1], [0], [0], [1], [0, 0, 1, 1], [], []>} : vector<8x128xf32>, vector<128x128xf32>, vector<8x128xf32> -> vector<8x128xf32>
      %68 = arith.addf %67, %16 : vector<8x128xf32>
      %69 = math.tanh %68 : vector<8x128xf32>
      %cst_40 = arith.constant 1.250000e-01 : f32
      %70 = vector.broadcast %cst_40 : f32 to vector<8x128xf32>
      %71 = arith.mulf %70, %69 : vector<8x128xf32>
      %72 = arith.addf %51, %71 : vector<8x128xf32>
      %c0_41 = arith.constant 0 : index
      %c0_42 = arith.constant 0 : index
      %73 = vector.load %arg3[%c0_41, %c0_42] : memref<128x128xf32, #tpu.memory_space<vmem>>, vector<128x128xf32>
      %cst_43 = arith.constant dense<0.000000e+00> : vector<8x128xf32>
      %74 = tpu.matmul %72, %73, %cst_43 {dimension_numbers = #tpu.dot_dimension_numbers<[1], [0], [0], [1], [0, 0, 1, 1], [], []>} : vector<8x128xf32>, vector<128x128xf32>, vector<8x128xf32> -> vector<8x128xf32>
      %75 = arith.addf %74, %16 : vector<8x128xf32>
      %76 = math.tanh %75 : vector<8x128xf32>
      %cst_44 = arith.constant 2.000000e+00 : f32
      %77 = vector.broadcast %cst_44 : f32 to vector<8x128xf32>
      %78 = arith.mulf %77, %62 : vector<8x128xf32>
      %79 = arith.addf %55, %78 : vector<8x128xf32>
      %cst_45 = arith.constant 2.000000e+00 : f32
      %80 = vector.broadcast %cst_45 : f32 to vector<8x128xf32>
      %81 = arith.mulf %80, %69 : vector<8x128xf32>
      %82 = arith.addf %79, %81 : vector<8x128xf32>
      %83 = arith.addf %82, %76 : vector<8x128xf32>
      %cst_46 = arith.constant 0.020833334 : f32
      %84 = vector.broadcast %cst_46 : f32 to vector<8x128xf32>
      %85 = arith.mulf %84, %83 : vector<8x128xf32>
      %86 = arith.addf %51, %85 : vector<8x128xf32>
      %c0_47 = arith.constant 0 : index
      %c0_48 = arith.constant 0 : index
      %87 = vector.load %arg3[%c0_47, %c0_48] : memref<128x128xf32, #tpu.memory_space<vmem>>, vector<128x128xf32>
      %cst_49 = arith.constant dense<0.000000e+00> : vector<8x128xf32>
      %88 = tpu.matmul %86, %87, %cst_49 {dimension_numbers = #tpu.dot_dimension_numbers<[1], [0], [0], [1], [0, 0, 1, 1], [], []>} : vector<8x128xf32>, vector<128x128xf32>, vector<8x128xf32> -> vector<8x128xf32>
      %89 = arith.addf %88, %16 : vector<8x128xf32>
      %90 = math.tanh %89 : vector<8x128xf32>
      %cst_50 = arith.constant 6.250000e-02 : f32
      %91 = vector.broadcast %cst_50 : f32 to vector<8x128xf32>
      %92 = arith.mulf %91, %90 : vector<8x128xf32>
      %93 = arith.addf %86, %92 : vector<8x128xf32>
      %c0_51 = arith.constant 0 : index
      %c0_52 = arith.constant 0 : index
      %94 = vector.load %arg3[%c0_51, %c0_52] : memref<128x128xf32, #tpu.memory_space<vmem>>, vector<128x128xf32>
      %cst_53 = arith.constant dense<0.000000e+00> : vector<8x128xf32>
      %95 = tpu.matmul %93, %94, %cst_53 {dimension_numbers = #tpu.dot_dimension_numbers<[1], [0], [0], [1], [0, 0, 1, 1], [], []>} : vector<8x128xf32>, vector<128x128xf32>, vector<8x128xf32> -> vector<8x128xf32>
      %96 = arith.addf %95, %16 : vector<8x128xf32>
      %97 = math.tanh %96 : vector<8x128xf32>
      %cst_54 = arith.constant 6.250000e-02 : f32
      %98 = vector.broadcast %cst_54 : f32 to vector<8x128xf32>
      %99 = arith.mulf %98, %97 : vector<8x128xf32>
      %100 = arith.addf %86, %99 : vector<8x128xf32>
      %c0_55 = arith.constant 0 : index
      %c0_56 = arith.constant 0 : index
      %101 = vector.load %arg3[%c0_55, %c0_56] : memref<128x128xf32, #tpu.memory_space<vmem>>, vector<128x128xf32>
      %cst_57 = arith.constant dense<0.000000e+00> : vector<8x128xf32>
      %102 = tpu.matmul %100, %101, %cst_57 {dimension_numbers = #tpu.dot_dimension_numbers<[1], [0], [0], [1], [0, 0, 1, 1], [], []>} : vector<8x128xf32>, vector<128x128xf32>, vector<8x128xf32> -> vector<8x128xf32>
      %103 = arith.addf %102, %16 : vector<8x128xf32>
      %104 = math.tanh %103 : vector<8x128xf32>
      %cst_58 = arith.constant 1.250000e-01 : f32
      %105 = vector.broadcast %cst_58 : f32 to vector<8x128xf32>
      %106 = arith.mulf %105, %104 : vector<8x128xf32>
      %107 = arith.addf %86, %106 : vector<8x128xf32>
      %c0_59 = arith.constant 0 : index
      %c0_60 = arith.constant 0 : index
      %108 = vector.load %arg3[%c0_59, %c0_60] : memref<128x128xf32, #tpu.memory_space<vmem>>, vector<128x128xf32>
      %cst_61 = arith.constant dense<0.000000e+00> : vector<8x128xf32>
      %109 = tpu.matmul %107, %108, %cst_61 {dimension_numbers = #tpu.dot_dimension_numbers<[1], [0], [0], [1], [0, 0, 1, 1], [], []>} : vector<8x128xf32>, vector<128x128xf32>, vector<8x128xf32> -> vector<8x128xf32>
      %110 = arith.addf %109, %16 : vector<8x128xf32>
      %111 = math.tanh %110 : vector<8x128xf32>
      %cst_62 = arith.constant 2.000000e+00 : f32
      %112 = vector.broadcast %cst_62 : f32 to vector<8x128xf32>
      %113 = arith.mulf %112, %97 : vector<8x128xf32>
      %114 = arith.addf %90, %113 : vector<8x128xf32>
      %cst_63 = arith.constant 2.000000e+00 : f32
      %115 = vector.broadcast %cst_63 : f32 to vector<8x128xf32>
      %116 = arith.mulf %115, %104 : vector<8x128xf32>
      %117 = arith.addf %114, %116 : vector<8x128xf32>
      %118 = arith.addf %117, %111 : vector<8x128xf32>
      %cst_64 = arith.constant 0.020833334 : f32
      %119 = vector.broadcast %cst_64 : f32 to vector<8x128xf32>
      %120 = arith.mulf %119, %118 : vector<8x128xf32>
      %121 = arith.addf %86, %120 : vector<8x128xf32>
      %c0_65 = arith.constant 0 : index
      %c0_66 = arith.constant 0 : index
      %122 = vector.load %arg3[%c0_65, %c0_66] : memref<128x128xf32, #tpu.memory_space<vmem>>, vector<128x128xf32>
      %cst_67 = arith.constant dense<0.000000e+00> : vector<8x128xf32>
      %123 = tpu.matmul %121, %122, %cst_67 {dimension_numbers = #tpu.dot_dimension_numbers<[1], [0], [0], [1], [0, 0, 1, 1], [], []>} : vector<8x128xf32>, vector<128x128xf32>, vector<8x128xf32> -> vector<8x128xf32>
      %124 = arith.addf %123, %16 : vector<8x128xf32>
      %125 = math.tanh %124 : vector<8x128xf32>
      %cst_68 = arith.constant 6.250000e-02 : f32
      %126 = vector.broadcast %cst_68 : f32 to vector<8x128xf32>
      %127 = arith.mulf %126, %125 : vector<8x128xf32>
      %128 = arith.addf %121, %127 : vector<8x128xf32>
      %c0_69 = arith.constant 0 : index
      %c0_70 = arith.constant 0 : index
      %129 = vector.load %arg3[%c0_69, %c0_70] : memref<128x128xf32, #tpu.memory_space<vmem>>, vector<128x128xf32>
      %cst_71 = arith.constant dense<0.000000e+00> : vector<8x128xf32>
      %130 = tpu.matmul %128, %129, %cst_71 {dimension_numbers = #tpu.dot_dimension_numbers<[1], [0], [0], [1], [0, 0, 1, 1], [], []>} : vector<8x128xf32>, vector<128x128xf32>, vector<8x128xf32> -> vector<8x128xf32>
      %131 = arith.addf %130, %16 : vector<8x128xf32>
      %132 = math.tanh %131 : vector<8x128xf32>
      %cst_72 = arith.constant 6.250000e-02 : f32
      %133 = vector.broadcast %cst_72 : f32 to vector<8x128xf32>
      %134 = arith.mulf %133, %132 : vector<8x128xf32>
      %135 = arith.addf %121, %134 : vector<8x128xf32>
      %c0_73 = arith.constant 0 : index
      %c0_74 = arith.constant 0 : index
      %136 = vector.load %arg3[%c0_73, %c0_74] : memref<128x128xf32, #tpu.memory_space<vmem>>, vector<128x128xf32>
      %cst_75 = arith.constant dense<0.000000e+00> : vector<8x128xf32>
      %137 = tpu.matmul %135, %136, %cst_75 {dimension_numbers = #tpu.dot_dimension_numbers<[1], [0], [0], [1], [0, 0, 1, 1], [], []>} : vector<8x128xf32>, vector<128x128xf32>, vector<8x128xf32> -> vector<8x128xf32>
      %138 = arith.addf %137, %16 : vector<8x128xf32>
      %139 = math.tanh %138 : vector<8x128xf32>
      %cst_76 = arith.constant 1.250000e-01 : f32
      %140 = vector.broadcast %cst_76 : f32 to vector<8x128xf32>
      %141 = arith.mulf %140, %139 : vector<8x128xf32>
      %142 = arith.addf %121, %141 : vector<8x128xf32>
      %c0_77 = arith.constant 0 : index
      %c0_78 = arith.constant 0 : index
      %143 = vector.load %arg3[%c0_77, %c0_78] : memref<128x128xf32, #tpu.memory_space<vmem>>, vector<128x128xf32>
      %cst_79 = arith.constant dense<0.000000e+00> : vector<8x128xf32>
      %144 = tpu.matmul %142, %143, %cst_79 {dimension_numbers = #tpu.dot_dimension_numbers<[1], [0], [0], [1], [0, 0, 1, 1], [], []>} : vector<8x128xf32>, vector<128x128xf32>, vector<8x128xf32> -> vector<8x128xf32>
      %145 = arith.addf %144, %16 : vector<8x128xf32>
      %146 = math.tanh %145 : vector<8x128xf32>
      %cst_80 = arith.constant 2.000000e+00 : f32
      %147 = vector.broadcast %cst_80 : f32 to vector<8x128xf32>
      %148 = arith.mulf %147, %132 : vector<8x128xf32>
      %149 = arith.addf %125, %148 : vector<8x128xf32>
      %cst_81 = arith.constant 2.000000e+00 : f32
      %150 = vector.broadcast %cst_81 : f32 to vector<8x128xf32>
      %151 = arith.mulf %150, %139 : vector<8x128xf32>
      %152 = arith.addf %149, %151 : vector<8x128xf32>
      %153 = arith.addf %152, %146 : vector<8x128xf32>
      %cst_82 = arith.constant 0.020833334 : f32
      %154 = vector.broadcast %cst_82 : f32 to vector<8x128xf32>
      %155 = arith.mulf %154, %153 : vector<8x128xf32>
      %156 = arith.addf %121, %155 : vector<8x128xf32>
      %c0_83 = arith.constant 0 : index
      %c0_84 = arith.constant 0 : index
      %157 = vector.load %arg3[%c0_83, %c0_84] : memref<128x128xf32, #tpu.memory_space<vmem>>, vector<128x128xf32>
      %cst_85 = arith.constant dense<0.000000e+00> : vector<8x128xf32>
      %158 = tpu.matmul %156, %157, %cst_85 {dimension_numbers = #tpu.dot_dimension_numbers<[1], [0], [0], [1], [0, 0, 1, 1], [], []>} : vector<8x128xf32>, vector<128x128xf32>, vector<8x128xf32> -> vector<8x128xf32>
      %159 = arith.addf %158, %16 : vector<8x128xf32>
      %160 = math.tanh %159 : vector<8x128xf32>
      %cst_86 = arith.constant 6.250000e-02 : f32
      %161 = vector.broadcast %cst_86 : f32 to vector<8x128xf32>
      %162 = arith.mulf %161, %160 : vector<8x128xf32>
      %163 = arith.addf %156, %162 : vector<8x128xf32>
      %c0_87 = arith.constant 0 : index
      %c0_88 = arith.constant 0 : index
      %164 = vector.load %arg3[%c0_87, %c0_88] : memref<128x128xf32, #tpu.memory_space<vmem>>, vector<128x128xf32>
      %cst_89 = arith.constant dense<0.000000e+00> : vector<8x128xf32>
      %165 = tpu.matmul %163, %164, %cst_89 {dimension_numbers = #tpu.dot_dimension_numbers<[1], [0], [0], [1], [0, 0, 1, 1], [], []>} : vector<8x128xf32>, vector<128x128xf32>, vector<8x128xf32> -> vector<8x128xf32>
      %166 = arith.addf %165, %16 : vector<8x128xf32>
      %167 = math.tanh %166 : vector<8x128xf32>
      %cst_90 = arith.constant 6.250000e-02 : f32
      %168 = vector.broadcast %cst_90 : f32 to vector<8x128xf32>
      %169 = arith.mulf %168, %167 : vector<8x128xf32>
      %170 = arith.addf %156, %169 : vector<8x128xf32>
      %c0_91 = arith.constant 0 : index
      %c0_92 = arith.constant 0 : index
      %171 = vector.load %arg3[%c0_91, %c0_92] : memref<128x128xf32, #tpu.memory_space<vmem>>, vector<128x128xf32>
      %cst_93 = arith.constant dense<0.000000e+00> : vector<8x128xf32>
      %172 = tpu.matmul %170, %171, %cst_93 {dimension_numbers = #tpu.dot_dimension_numbers<[1], [0], [0], [1], [0, 0, 1, 1], [], []>} : vector<8x128xf32>, vector<128x128xf32>, vector<8x128xf32> -> vector<8x128xf32>
      %173 = arith.addf %172, %16 : vector<8x128xf32>
      %174 = math.tanh %173 : vector<8x128xf32>
      %cst_94 = arith.constant 1.250000e-01 : f32
      %175 = vector.broadcast %cst_94 : f32 to vector<8x128xf32>
      %176 = arith.mulf %175, %174 : vector<8x128xf32>
      %177 = arith.addf %156, %176 : vector<8x128xf32>
      %c0_95 = arith.constant 0 : index
      %c0_96 = arith.constant 0 : index
      %178 = vector.load %arg3[%c0_95, %c0_96] : memref<128x128xf32, #tpu.memory_space<vmem>>, vector<128x128xf32>
      %cst_97 = arith.constant dense<0.000000e+00> : vector<8x128xf32>
      %179 = tpu.matmul %177, %178, %cst_97 {dimension_numbers = #tpu.dot_dimension_numbers<[1], [0], [0], [1], [0, 0, 1, 1], [], []>} : vector<8x128xf32>, vector<128x128xf32>, vector<8x128xf32> -> vector<8x128xf32>
      %180 = arith.addf %179, %16 : vector<8x128xf32>
      %181 = math.tanh %180 : vector<8x128xf32>
      %cst_98 = arith.constant 2.000000e+00 : f32
      %182 = vector.broadcast %cst_98 : f32 to vector<8x128xf32>
      %183 = arith.mulf %182, %167 : vector<8x128xf32>
      %184 = arith.addf %160, %183 : vector<8x128xf32>
      %cst_99 = arith.constant 2.000000e+00 : f32
      %185 = vector.broadcast %cst_99 : f32 to vector<8x128xf32>
      %186 = arith.mulf %185, %174 : vector<8x128xf32>
      %187 = arith.addf %184, %186 : vector<8x128xf32>
      %188 = arith.addf %187, %181 : vector<8x128xf32>
      %cst_100 = arith.constant 0.020833334 : f32
      %189 = vector.broadcast %cst_100 : f32 to vector<8x128xf32>
      %190 = arith.mulf %189, %188 : vector<8x128xf32>
      %191 = arith.addf %156, %190 : vector<8x128xf32>
      %c0_101 = arith.constant 0 : index
      %c0_102 = arith.constant 0 : index
      %192 = vector.load %arg3[%c0_101, %c0_102] : memref<128x128xf32, #tpu.memory_space<vmem>>, vector<128x128xf32>
      %cst_103 = arith.constant dense<0.000000e+00> : vector<8x128xf32>
      %193 = tpu.matmul %191, %192, %cst_103 {dimension_numbers = #tpu.dot_dimension_numbers<[1], [0], [0], [1], [0, 0, 1, 1], [], []>} : vector<8x128xf32>, vector<128x128xf32>, vector<8x128xf32> -> vector<8x128xf32>
      %194 = arith.addf %193, %16 : vector<8x128xf32>
      %195 = math.tanh %194 : vector<8x128xf32>
      %cst_104 = arith.constant 6.250000e-02 : f32
      %196 = vector.broadcast %cst_104 : f32 to vector<8x128xf32>
      %197 = arith.mulf %196, %195 : vector<8x128xf32>
      %198 = arith.addf %191, %197 : vector<8x128xf32>
      %c0_105 = arith.constant 0 : index
      %c0_106 = arith.constant 0 : index
      %199 = vector.load %arg3[%c0_105, %c0_106] : memref<128x128xf32, #tpu.memory_space<vmem>>, vector<128x128xf32>
      %cst_107 = arith.constant dense<0.000000e+00> : vector<8x128xf32>
      %200 = tpu.matmul %198, %199, %cst_107 {dimension_numbers = #tpu.dot_dimension_numbers<[1], [0], [0], [1], [0, 0, 1, 1], [], []>} : vector<8x128xf32>, vector<128x128xf32>, vector<8x128xf32> -> vector<8x128xf32>
      %201 = arith.addf %200, %16 : vector<8x128xf32>
      %202 = math.tanh %201 : vector<8x128xf32>
      %cst_108 = arith.constant 6.250000e-02 : f32
      %203 = vector.broadcast %cst_108 : f32 to vector<8x128xf32>
      %204 = arith.mulf %203, %202 : vector<8x128xf32>
      %205 = arith.addf %191, %204 : vector<8x128xf32>
      %c0_109 = arith.constant 0 : index
      %c0_110 = arith.constant 0 : index
      %206 = vector.load %arg3[%c0_109, %c0_110] : memref<128x128xf32, #tpu.memory_space<vmem>>, vector<128x128xf32>
      %cst_111 = arith.constant dense<0.000000e+00> : vector<8x128xf32>
      %207 = tpu.matmul %205, %206, %cst_111 {dimension_numbers = #tpu.dot_dimension_numbers<[1], [0], [0], [1], [0, 0, 1, 1], [], []>} : vector<8x128xf32>, vector<128x128xf32>, vector<8x128xf32> -> vector<8x128xf32>
      %208 = arith.addf %207, %16 : vector<8x128xf32>
      %209 = math.tanh %208 : vector<8x128xf32>
      %cst_112 = arith.constant 1.250000e-01 : f32
      %210 = vector.broadcast %cst_112 : f32 to vector<8x128xf32>
      %211 = arith.mulf %210, %209 : vector<8x128xf32>
      %212 = arith.addf %191, %211 : vector<8x128xf32>
      %c0_113 = arith.constant 0 : index
      %c0_114 = arith.constant 0 : index
      %213 = vector.load %arg3[%c0_113, %c0_114] : memref<128x128xf32, #tpu.memory_space<vmem>>, vector<128x128xf32>
      %cst_115 = arith.constant dense<0.000000e+00> : vector<8x128xf32>
      %214 = tpu.matmul %212, %213, %cst_115 {dimension_numbers = #tpu.dot_dimension_numbers<[1], [0], [0], [1], [0, 0, 1, 1], [], []>} : vector<8x128xf32>, vector<128x128xf32>, vector<8x128xf32> -> vector<8x128xf32>
      %215 = arith.addf %214, %16 : vector<8x128xf32>
      %216 = math.tanh %215 : vector<8x128xf32>
      %cst_116 = arith.constant 2.000000e+00 : f32
      %217 = vector.broadcast %cst_116 : f32 to vector<8x128xf32>
      %218 = arith.mulf %217, %202 : vector<8x128xf32>
      %219 = arith.addf %195, %218 : vector<8x128xf32>
      %cst_117 = arith.constant 2.000000e+00 : f32
      %220 = vector.broadcast %cst_117 : f32 to vector<8x128xf32>
      %221 = arith.mulf %220, %209 : vector<8x128xf32>
      %222 = arith.addf %219, %221 : vector<8x128xf32>
      %223 = arith.addf %222, %216 : vector<8x128xf32>
      %cst_118 = arith.constant 0.020833334 : f32
      %224 = vector.broadcast %cst_118 : f32 to vector<8x128xf32>
      %225 = arith.mulf %224, %223 : vector<8x128xf32>
      %226 = arith.addf %191, %225 : vector<8x128xf32>
      %c0_119 = arith.constant 0 : index
      %c0_120 = arith.constant 0 : index
      %227 = vector.load %arg3[%c0_119, %c0_120] : memref<128x128xf32, #tpu.memory_space<vmem>>, vector<128x128xf32>
      %cst_121 = arith.constant dense<0.000000e+00> : vector<8x128xf32>
      %228 = tpu.matmul %226, %227, %cst_121 {dimension_numbers = #tpu.dot_dimension_numbers<[1], [0], [0], [1], [0, 0, 1, 1], [], []>} : vector<8x128xf32>, vector<128x128xf32>, vector<8x128xf32> -> vector<8x128xf32>
      %229 = arith.addf %228, %16 : vector<8x128xf32>
      %230 = math.tanh %229 : vector<8x128xf32>
      %cst_122 = arith.constant 6.250000e-02 : f32
      %231 = vector.broadcast %cst_122 : f32 to vector<8x128xf32>
      %232 = arith.mulf %231, %230 : vector<8x128xf32>
      %233 = arith.addf %226, %232 : vector<8x128xf32>
      %c0_123 = arith.constant 0 : index
      %c0_124 = arith.constant 0 : index
      %234 = vector.load %arg3[%c0_123, %c0_124] : memref<128x128xf32, #tpu.memory_space<vmem>>, vector<128x128xf32>
      %cst_125 = arith.constant dense<0.000000e+00> : vector<8x128xf32>
      %235 = tpu.matmul %233, %234, %cst_125 {dimension_numbers = #tpu.dot_dimension_numbers<[1], [0], [0], [1], [0, 0, 1, 1], [], []>} : vector<8x128xf32>, vector<128x128xf32>, vector<8x128xf32> -> vector<8x128xf32>
      %236 = arith.addf %235, %16 : vector<8x128xf32>
      %237 = math.tanh %236 : vector<8x128xf32>
      %cst_126 = arith.constant 6.250000e-02 : f32
      %238 = vector.broadcast %cst_126 : f32 to vector<8x128xf32>
      %239 = arith.mulf %238, %237 : vector<8x128xf32>
      %240 = arith.addf %226, %239 : vector<8x128xf32>
      %c0_127 = arith.constant 0 : index
      %c0_128 = arith.constant 0 : index
      %241 = vector.load %arg3[%c0_127, %c0_128] : memref<128x128xf32, #tpu.memory_space<vmem>>, vector<128x128xf32>
      %cst_129 = arith.constant dense<0.000000e+00> : vector<8x128xf32>
      %242 = tpu.matmul %240, %241, %cst_129 {dimension_numbers = #tpu.dot_dimension_numbers<[1], [0], [0], [1], [0, 0, 1, 1], [], []>} : vector<8x128xf32>, vector<128x128xf32>, vector<8x128xf32> -> vector<8x128xf32>
      %243 = arith.addf %242, %16 : vector<8x128xf32>
      %244 = math.tanh %243 : vector<8x128xf32>
      %cst_130 = arith.constant 1.250000e-01 : f32
      %245 = vector.broadcast %cst_130 : f32 to vector<8x128xf32>
      %246 = arith.mulf %245, %244 : vector<8x128xf32>
      %247 = arith.addf %226, %246 : vector<8x128xf32>
      %c0_131 = arith.constant 0 : index
      %c0_132 = arith.constant 0 : index
      %248 = vector.load %arg3[%c0_131, %c0_132] : memref<128x128xf32, #tpu.memory_space<vmem>>, vector<128x128xf32>
      %cst_133 = arith.constant dense<0.000000e+00> : vector<8x128xf32>
      %249 = tpu.matmul %247, %248, %cst_133 {dimension_numbers = #tpu.dot_dimension_numbers<[1], [0], [0], [1], [0, 0, 1, 1], [], []>} : vector<8x128xf32>, vector<128x128xf32>, vector<8x128xf32> -> vector<8x128xf32>
      %250 = arith.addf %249, %16 : vector<8x128xf32>
      %251 = math.tanh %250 : vector<8x128xf32>
      %cst_134 = arith.constant 2.000000e+00 : f32
      %252 = vector.broadcast %cst_134 : f32 to vector<8x128xf32>
      %253 = arith.mulf %252, %237 : vector<8x128xf32>
      %254 = arith.addf %230, %253 : vector<8x128xf32>
      %cst_135 = arith.constant 2.000000e+00 : f32
      %255 = vector.broadcast %cst_135 : f32 to vector<8x128xf32>
      %256 = arith.mulf %255, %244 : vector<8x128xf32>
      %257 = arith.addf %254, %256 : vector<8x128xf32>
      %258 = arith.addf %257, %251 : vector<8x128xf32>
      %cst_136 = arith.constant 0.020833334 : f32
      %259 = vector.broadcast %cst_136 : f32 to vector<8x128xf32>
      %260 = arith.mulf %259, %258 : vector<8x128xf32>
      %261 = arith.addf %226, %260 : vector<8x128xf32>
      %c0_137 = arith.constant 0 : index
      %c0_138 = arith.constant 0 : index
      %262 = vector.load %arg3[%c0_137, %c0_138] : memref<128x128xf32, #tpu.memory_space<vmem>>, vector<128x128xf32>
      %cst_139 = arith.constant dense<0.000000e+00> : vector<8x128xf32>
      %263 = tpu.matmul %261, %262, %cst_139 {dimension_numbers = #tpu.dot_dimension_numbers<[1], [0], [0], [1], [0, 0, 1, 1], [], []>} : vector<8x128xf32>, vector<128x128xf32>, vector<8x128xf32> -> vector<8x128xf32>
      %264 = arith.addf %263, %16 : vector<8x128xf32>
      %265 = math.tanh %264 : vector<8x128xf32>
      %cst_140 = arith.constant 6.250000e-02 : f32
      %266 = vector.broadcast %cst_140 : f32 to vector<8x128xf32>
      %267 = arith.mulf %266, %265 : vector<8x128xf32>
      %268 = arith.addf %261, %267 : vector<8x128xf32>
      %c0_141 = arith.constant 0 : index
      %c0_142 = arith.constant 0 : index
      %269 = vector.load %arg3[%c0_141, %c0_142] : memref<128x128xf32, #tpu.memory_space<vmem>>, vector<128x128xf32>
      %cst_143 = arith.constant dense<0.000000e+00> : vector<8x128xf32>
      %270 = tpu.matmul %268, %269, %cst_143 {dimension_numbers = #tpu.dot_dimension_numbers<[1], [0], [0], [1], [0, 0, 1, 1], [], []>} : vector<8x128xf32>, vector<128x128xf32>, vector<8x128xf32> -> vector<8x128xf32>
      %271 = arith.addf %270, %16 : vector<8x128xf32>
      %272 = math.tanh %271 : vector<8x128xf32>
      %cst_144 = arith.constant 6.250000e-02 : f32
      %273 = vector.broadcast %cst_144 : f32 to vector<8x128xf32>
      %274 = arith.mulf %273, %272 : vector<8x128xf32>
      %275 = arith.addf %261, %274 : vector<8x128xf32>
      %c0_145 = arith.constant 0 : index
      %c0_146 = arith.constant 0 : index
      %276 = vector.load %arg3[%c0_145, %c0_146] : memref<128x128xf32, #tpu.memory_space<vmem>>, vector<128x128xf32>
      %cst_147 = arith.constant dense<0.000000e+00> : vector<8x128xf32>
      %277 = tpu.matmul %275, %276, %cst_147 {dimension_numbers = #tpu.dot_dimension_numbers<[1], [0], [0], [1], [0, 0, 1, 1], [], []>} : vector<8x128xf32>, vector<128x128xf32>, vector<8x128xf32> -> vector<8x128xf32>
      %278 = arith.addf %277, %16 : vector<8x128xf32>
      %279 = math.tanh %278 : vector<8x128xf32>
      %cst_148 = arith.constant 1.250000e-01 : f32
      %280 = vector.broadcast %cst_148 : f32 to vector<8x128xf32>
      %281 = arith.mulf %280, %279 : vector<8x128xf32>
      %282 = arith.addf %261, %281 : vector<8x128xf32>
      %c0_149 = arith.constant 0 : index
      %c0_150 = arith.constant 0 : index
      %283 = vector.load %arg3[%c0_149, %c0_150] : memref<128x128xf32, #tpu.memory_space<vmem>>, vector<128x128xf32>
      %cst_151 = arith.constant dense<0.000000e+00> : vector<8x128xf32>
      %284 = tpu.matmul %282, %283, %cst_151 {dimension_numbers = #tpu.dot_dimension_numbers<[1], [0], [0], [1], [0, 0, 1, 1], [], []>} : vector<8x128xf32>, vector<128x128xf32>, vector<8x128xf32> -> vector<8x128xf32>
      %285 = arith.addf %284, %16 : vector<8x128xf32>
      %286 = math.tanh %285 : vector<8x128xf32>
      %cst_152 = arith.constant 2.000000e+00 : f32
      %287 = vector.broadcast %cst_152 : f32 to vector<8x128xf32>
      %288 = arith.mulf %287, %272 : vector<8x128xf32>
      %289 = arith.addf %265, %288 : vector<8x128xf32>
      %cst_153 = arith.constant 2.000000e+00 : f32
      %290 = vector.broadcast %cst_153 : f32 to vector<8x128xf32>
      %291 = arith.mulf %290, %279 : vector<8x128xf32>
      %292 = arith.addf %289, %291 : vector<8x128xf32>
      %293 = arith.addf %292, %286 : vector<8x128xf32>
      %cst_154 = arith.constant 0.020833334 : f32
      %294 = vector.broadcast %cst_154 : f32 to vector<8x128xf32>
      %295 = arith.mulf %294, %293 : vector<8x128xf32>
      %296 = arith.addf %261, %295 : vector<8x128xf32>
      %c1_i32_155 = arith.constant 1 : i32
      %297 = arith.addi %arg5, %c1_i32_155 : i32
      %298 = arith.index_cast %297 : i32 to index
      %c0_156 = arith.constant 0 : index
      %c0_157 = arith.constant 0 : index
      %299 = vector.load %arg4[%298, %c0_156, %c0_157] : memref<9x8x128xf32, #tpu.memory_space<vmem>>, vector<1x8x128xf32>
      %300 = vector.shape_cast %299 : vector<1x8x128xf32> to vector<8x128xf32>
      %301 = vector.shape_cast %296 : vector<8x128xf32> to vector<1x8x128xf32>
      tpu.vector_store %arg4[%298, %c0_156, %c0_157], %301 {strides = array<i32>} : memref<9x8x128xf32, #tpu.memory_space<vmem>>, vector<1x8x128xf32>,
      scf.yield %296 : vector<8x128xf32>
    }
    %c8_i32_3 = arith.constant 8 : i32
    return
  }
}

</mosaic_0001>

<bundles_post_ra>
// kernel: ode_rnn_forward.1
= control target key start
LH: loop header
LB: loop body
LE: loop exit
PB: predicated region body
PF: predicated region fallthrough
CT: control target
= control target key end

     0   :  { %9 = vsyncpa [#allocation3], 0  ;;  %v4424_v0 = vmov 0.0   ;;  %v4455_v1 = vmov 0.0   ;;  %s4457_s15 = smov 0   ;;  %s6007_s0 = inlined_call_operand.vmem [shape: f32[8,8,128], index: 0, kind: input, shape index: {}]   ;;  %s6008_s1 = inlined_call_operand.vmem [shape: f32[8,8,128], index: 1, kind: input, shape index: {}]   ;;  %s6009_s2 = inlined_call_operand.vmem [shape: f32[128,128], index: 2, kind: input, shape index: {}]   ;;  %s6010_s3 = inlined_call_operand.vmem [shape: f32[128,128], index: 3, kind: input, shape index: {}]   ;;  %s6011_s4 = inlined_call_operand.hbm [shape: f32[9,8,128], index: 4, kind: output, shape index: {}]  }
   0x1   :  { %18 = vst [vmem:[#allocation2] sm:$0xff] %v4424_v0 }
   0x2 LB: > { %v41_v2 = vld [vmem:[%s6009_s2 + $0x78] sm:$0xff]  ;;  %v4425_v3 = vmov 0.0   ;;  %v40_v4 = vld [vmem:[%s6009_s2 + $0x70] sm:$0xff]  ;;  %vm4426_vm0 = vmmov 0   ;;  %v39_v5 = vld [vmem:[%s6009_s2 + $0x68] sm:$0xff]  ;;  %s4683_s30 = sshll.u32 %s4422_s15, 3  ;;  %s4422_s15 = sphi %s4457_s15, %s24_s15   ;;  %v4418_v1 = vphi %v4455_v1, %v2509_v1  }
   0x3   : > { %3109 = vmatprep.subr.mxu0 %v4425_v3  ;;  %3141 = vmatprep.mubr.msk.f32.mxu0 %vm4426_vm0, %v4425_v3  ;;  %v38_v6 = vld [vmem:[%s6009_s2 + $0x60] sm:$0xff]  ;;  %v4488_v7 = vld [vmem:[%s6010_s3 + $0x78] sm:$0xff]  ;;  %v4493_v8 = vld [vmem:[%s6010_s3 + $0x70] sm:$0xff]  ;;  %s43_s7 = scalar_lea.vmem %s6007_s0, %s4683_s30  ;;  %s4730_s10 = scalar_lea.vmem %s6008_s1, %s4683_s30 }
   0x4   : > { %3110 = vmatpush3.msra.mxu0 %v41_v2  ;;  %3144 = vmatprep.subr.mxu1 %v4425_v3  ;;  %v37_v9 = vld [vmem:[%s6009_s2 + $0x58] sm:$0xff]  ;;  %v4504_v10 = vld [vmem:[%s6010_s3 + $0x68] sm:$0xff]  ;;  %v36_v11 = vld [vmem:[%s6009_s2 + $0x50] sm:$0xff]  ;;  %s24_s15 = sadd.s32 1, %s4422_s15  }
   0x5   : > { %3111 = vmatprep.subr.mxu0 %v4425_v3  ;;  %3176 = vmatprep.mubr.msk.f32.mxu1 %vm4426_vm0, %v4425_v3  ;;  %v4515_v12 = vld [vmem:[%s6010_s3 + $0x60] sm:$0xff]  ;;  %v35_v13 = vld [vmem:[%s6009_s2 + $0x48] sm:$0xff]  ;;  %v4526_v14 = vld [vmem:[%s6010_s3 + $0x58] sm:$0xff]  ;;  %p21_p0 = scmp.ge.s32.totalorder %s24_s15, 8  }
   0x6   : > { %3112 = vmatpush3.msra.mxu0 %v40_v4  ;;  %3145 = vmatpush3.msra.mxu1 %v4488_v7  ;;  %v34_v15 = vld [vmem:[%s6009_s2 + $0x40] sm:$0xff]  ;;  %v4537_v16 = vld [vmem:[%s6010_s3 + $0x50] sm:$0xff]  ;;  %v33_v17 = vld [vmem:[%s6009_s2 + $0x38] sm:$0xff]  ;;  %s4427_s5 = smov (%p21_p0), [#allocation2]  }
   0x7   : > { %3113 = vmatprep.subr.mxu0 %v4425_v3  ;;  %3146 = vmatprep.subr.mxu1 %v4425_v3  ;;  %v4548_v18 = vld [vmem:[%s6010_s3 + $0x48] sm:$0xff]  ;;  %v32_v19 = vld [vmem:[%s6009_s2 + $0x30] sm:$0xff]  ;;  %v30_v21 = vld [vmem:[%s6009_s2 + $0x20] sm:$0xff]  ;;  %s2519_s6 = sshll.u32 (%p21_p0), %s4427_s5, 4  ;;  %s2520_s6 = int_to_ptr.vmem [resolvable:$true] %s2519_s6 }
   0x8   : > { %3114 = vmatpush3.msra.mxu0 %v39_v5  ;;  %3147 = vmatpush3.msra.mxu1 %v4493_v8  ;;  %v31_v20 = vld [vmem:[%s6009_s2 + $0x28] sm:$0xff]  ;;  %v29_v22 = vld [vmem:[%s6009_s2 + $0x18] sm:$0xff]  ;;  %v28_v23 = vld [vmem:[%s6009_s2 + $0x10] sm:$0xff]  ;;  %p4391_p2 = scmp.lt.s32.totalorder (%p21_p0), %s2520_s6, %s2520_s6 }
   0x9   : > { %3115 = vmatprep.subr.mxu0 %v4425_v3  ;;  %3148 = vmatprep.subr.mxu1 %v4425_v3  ;;  %v27_v24 = vld [vmem:[%s6009_s2 + $0x8] sm:$0xff]  ;;  %v26_v25 = vld [vmem:[%s6009_s2] sm:$0xff]  ;;  %v4612_v27 = vld [vmem:[%s6010_s3 + $0x38] sm:$0xff] }
   0xa   : > { %3116 = vmatpush3.msra.mxu0 %v38_v6  ;;  %3149 = vmatpush3.msra.mxu1 %v4504_v10  ;;  %v4604_v26 = vld [vmem:[%s6010_s3 + $0x40] sm:$0xff]  ;;  %v4621_v28 = vld [vmem:[%s6010_s3 + $0x30] sm:$0xff]  ;;  %v4626_v29 = vld [vmem:[%s6010_s3 + $0x28] sm:$0xff] }
   0xb   : > { %3117 = vmatprep.subr.mxu0 %v4425_v3  ;;  %3150 = vmatprep.subr.mxu1 %v4425_v3  ;;  %v4635_v30 = vld [vmem:[%s6010_s3 + $0x20] sm:$0xff]  ;;  %v4644_v31 = vld [vmem:[%s6010_s3 + $0x18] sm:$0xff]  ;;  %v4653_v32 = vld [vmem:[%s6010_s3 + $0x10] sm:$0xff] }
   0xc   : > { %3118 = vmatpush3.msra.mxu0 %v37_v9  ;;  %3151 = vmatpush3.msra.mxu1 %v4515_v12  ;;  %v4662_v33 = vld [vmem:[%s6010_s3 + $0x8] sm:$0xff]  ;;  %v4671_v34 = vld [vmem:[%s6010_s3] sm:$0xff] }
   0xd   : > { %3119 = vmatprep.subr.mxu0 %v4425_v3  ;;  %3152 = vmatprep.subr.mxu1 %v4425_v3  ;;  %v44_v35 = vld [vmem:[%s43_s7] sm:$0xff]  ;;  %s4386_s7 = scalar_lea.vmem (%p21_p0), %s2520_s6, 1152 }
   0xe   : > { %3120 = vmatpush3.msra.mxu0 %v36_v11  ;;  %3153 = vmatpush3.msra.mxu1 %v4526_v14  ;;  %v4733_v40 = vld [vmem:[%s4730_s10] sm:$0xff]  ;;  %p4387_p1 = scmp.ne.s32.totalorder (%p21_p0), %s2520_s6, %s4386_s7  ;;  %p4392_p3 = scmp.lt.s32.totalorder (%p21_p0), %s4386_s7, %s4386_s7 }
   0xf   : > { %3121 = vmatprep.subr.mxu0 %v4425_v3  ;;  %3154 = vmatprep.subr.mxu1 %v4425_v3 }
  0x10   : > { %3122 = vmatpush3.msra.mxu0 %v35_v13  ;;  %3155 = vmatpush3.msra.mxu1 %v4537_v16  ;;  %p4393_p4 = por (%p21_p0), %p4392_p3, %p4391_p2 }
  0x11   : > { %3123 = vmatprep.subr.mxu0 %v4425_v3  ;;  %3156 = vmatprep.subr.mxu1 %v4425_v3 }
  0x12   : > { %3124 = vmatpush3.msra.mxu0 %v34_v15  ;;  %3157 = vmatpush3.msra.mxu1 %v4548_v18  ;;  %p4394_p5 = pnand (%p21_p0), %p4393_p4, %p4387_p1 }
  0x13   : > { %3125 = vmatprep.subr.mxu0 %v4425_v3  ;;  %3158 = vmatprep.subr.mxu1 %v4425_v3 }
  0x14   : > { %3126 = vmatpush3.msra.mxu0 %v33_v17  ;;  %3159 = vmatpush3.msra.mxu1 %v4604_v26 }
  0x15   : > { %3127 = vmatprep.subr.mxu0 %v4425_v3  ;;  %3160 = vmatprep.subr.mxu1 %v4425_v3 }
  0x16   : > { %3128 = vmatpush3.msra.mxu0 %v32_v19  ;;  %3161 = vmatpush3.msra.mxu1 %v4612_v27 }
  0x17   : > { %3129 = vmatprep.subr.mxu0 %v4425_v3  ;;  %3162 = vmatprep.subr.mxu1 %v4425_v3 }
  0x18   : > { %3130 = vmatpush3.msra.mxu0 %v31_v20  ;;  %3163 = vmatpush3.msra.mxu1 %v4621_v28 }
  0x19   : > { %3131 = vmatprep.subr.mxu0 %v4425_v3  ;;  %3164 = vmatprep.subr.mxu1 %v4425_v3 }
  0x1a   : > { %3132 = vmatpush3.msra.mxu0 %v30_v21  ;;  %3165 = vmatpush3.msra.mxu1 %v4626_v29 }
  0x1b   : > { %3133 = vmatprep.subr.mxu0 %v4425_v3  ;;  %3166 = vmatprep.subr.mxu1 %v4425_v3 }
  0x1c   : > { %3134 = vmatpush3.msra.mxu0 %v29_v22  ;;  %3167 = vmatpush3.msra.mxu1 %v4635_v30 }
  0x1d   : > { %3135 = vmatprep.subr.mxu0 %v4425_v3  ;;  %3168 = vmatprep.subr.mxu1 %v4425_v3 }
  0x1e   : > { %3136 = vmatpush3.msra.mxu0 %v28_v23  ;;  %3169 = vmatpush3.msra.mxu1 %v4644_v31 }
  0x1f   : > { %3137 = vmatprep.subr.mxu0 %v4425_v3  ;;  %3170 = vmatprep.subr.mxu1 %v4425_v3 }
  0x20   : > { %3138 = vmatpush3.msra.mxu0 %v27_v24  ;;  %3171 = vmatpush3.msra.mxu1 %v4653_v32 }
  0x21   : > { %3139 = vmatprep.subr.mxu0 %v4425_v3  ;;  %3172 = vmatprep.subr.mxu1 %v4425_v3 }
  0x22   : > { %3140 = vmatpush3.msra.mxu0 %v26_v25  ;;  %3173 = vmatpush3.msra.mxu1 %v4662_v33 }
  0x23   : > { %3142 = vmatmul.mubr.f32.vlgmr.msra.gmra.mxu0 %v4418_v1  ;;  %3179 = vmatprep.subr.mxu0 %v4425_v3 }
  0x24   : > { %3180 = vmatpush3.msra.mxu0 %v4488_v7  ;;  %3211 = vmatprep.mubr.msk.f32.mxu0 %vm4426_vm0, %v4425_v3 }
  0x25   : > { %3181 = vmatprep.subr.mxu0 %v4425_v3  ;;  %3174 = vmatprep.subr.mxu1 %v4425_v3 }
  0x26   : > { %3182 = vmatpush3.msra.mxu0 %v4493_v8  ;;  %3175 = vmatpush3.msra.mxu1 %v4671_v34 }
  0x27   : > { %3183 = vmatprep.subr.mxu0 %v4425_v3  ;;  %3214 = vmatprep.subr.mxu1 %v4425_v3 }
  0x28   : > { %3184 = vmatpush3.msra.mxu0 %v4504_v10 }
  0x29   : > { %3185 = vmatprep.subr.mxu0 %v4425_v3 }
  0x2a   : > { %3186 = vmatpush3.msra.mxu0 %v4515_v12 }
  0x2b   : > { %3187 = vmatprep.subr.mxu0 %v4425_v3 }
  0x2c   : > { %3188 = vmatpush3.msra.mxu0 %v4526_v14 }
  0x2d   : > { %3189 = vmatprep.subr.mxu0 %v4425_v3 }
  0x2e   : > { %3190 = vmatpush3.msra.mxu0 %v4537_v16 }
  0x2f   : > { %3191 = vmatprep.subr.mxu0 %v4425_v3 }
  0x30   : > { %3192 = vmatpush3.msra.mxu0 %v4548_v18 }
  0x31   : > { %3193 = vmatprep.subr.mxu0 %v4425_v3 }
  0x32   : > { %3194 = vmatpush3.msra.mxu0 %v4604_v26 }
  0x33   : > { %3195 = vmatprep.subr.mxu0 %v4425_v3 }
  0x34   : > { %3196 = vmatpush3.msra.mxu0 %v4612_v27 }
  0x35   : > { %3197 = vmatprep.subr.mxu0 %v4425_v3 }
  0x36   : > { %3198 = vmatpush3.msra.mxu0 %v4621_v28 }
  0x37   : > { %3199 = vmatprep.subr.mxu0 %v4425_v3 }
  0x38   : > { %3200 = vmatpush3.msra.mxu0 %v4626_v29 }
  0x39   : > { %3201 = vmatprep.subr.mxu0 %v4425_v3 }
  0x3a   : > { %3202 = vmatpush3.msra.mxu0 %v4635_v30 }
  0x3b   : > { %3203 = vmatprep.subr.mxu0 %v4425_v3 }
  0x3c   : > { %3204 = vmatpush3.msra.mxu0 %v4644_v31 }
  0x3d   : > { %3205 = vmatprep.subr.mxu0 %v4425_v3 }
  0x3e   : > { %3206 = vmatpush3.msra.mxu0 %v4653_v32 }
  0x3f   : > { %3207 = vmatprep.subr.mxu0 %v4425_v3 }
  0x40   : > { %3208 = vmatpush3.msra.mxu0 %v4662_v33 }
  0x41   : > { %3209 = vmatprep.subr.mxu0 %v4425_v3 }
  0x42   : > { %3210 = vmatpush3.msra.mxu0 %v4671_v34 }
  0x43   : > { %3249 = vmatprep.subr.mxu0 %v4425_v3 }
  0xe3   : > { %v111_v36 = vpop.f32.mrf.mxu0 }
  0xe4   : > { %v112_v37 = vadd.f32 %v111_v36, %v44_v35 }
  0xe5   : > { %v3143_v38 = vpop.f32.mrf.mxu0 }
  0xe6   : > { %4286 = vtanh.f32 %v112_v37 }
  0xf3   : > { %v4689_v39 = vpop.eup %4286 }
  0xf4   : > { %3177 = vmatmul.mubr.f32.vlgmr.msra.gmra.mxu1 %v4689_v39 }
  0xf5   : > { %3215 = vmatpush3.msra.mxu1 %v4488_v7  ;;  %3246 = vmatprep.mubr.msk.f32.mxu1 %vm4426_vm0, %v4425_v3 }
  0xf6   : > { %3216 = vmatprep.subr.mxu1 %v4425_v3 }
  0xf7   : > { %3217 = vmatpush3.msra.mxu1 %v4493_v8 }
  0xf8   : > { %3218 = vmatprep.subr.mxu1 %v4425_v3 }
  0xf9   : > { %3219 = vmatpush3.msra.mxu1 %v4504_v10 }
  0xfa   : > { %3220 = vmatprep.subr.mxu1 %v4425_v3 }
  0xfb   : > { %3221 = vmatpush3.msra.mxu1 %v4515_v12 }
  0xfc   : > { %3222 = vmatprep.subr.mxu1 %v4425_v3 }
  0xfd   : > { %3223 = vmatpush3.msra.mxu1 %v4526_v14 }
  0xfe   : > { %3224 = vmatprep.subr.mxu1 %v4425_v3 }
  0xff   : > { %3225 = vmatpush3.msra.mxu1 %v4537_v16 }
 0x100   : > { %3226 = vmatprep.subr.mxu1 %v4425_v3 }
 0x101   : > { %3227 = vmatpush3.msra.mxu1 %v4548_v18 }
 0x102   : > { %3228 = vmatprep.subr.mxu1 %v4425_v3 }
 0x103   : > { %3229 = vmatpush3.msra.mxu1 %v4604_v26 }
 0x104   : > { %3230 = vmatprep.subr.mxu1 %v4425_v3 }
 0x105   : > { %3231 = vmatpush3.msra.mxu1 %v4612_v27 }
 0x106   : > { %3232 = vmatprep.subr.mxu1 %v4425_v3 }
 0x107   : > { %3233 = vmatpush3.msra.mxu1 %v4621_v28 }
 0x108   : > { %3234 = vmatprep.subr.mxu1 %v4425_v3 }
 0x109   : > { %3235 = vmatpush3.msra.mxu1 %v4626_v29 }
 0x10a   : > { %3236 = vmatprep.subr.mxu1 %v4425_v3 }
 0x10b   : > { %3237 = vmatpush3.msra.mxu1 %v4635_v30 }
 0x10c   : > { %3238 = vmatprep.subr.mxu1 %v4425_v3 }
 0x10d   : > { %3239 = vmatpush3.msra.mxu1 %v4644_v31 }
 0x10e   : > { %3240 = vmatprep.subr.mxu1 %v4425_v3 }
 0x10f   : > { %3241 = vmatpush3.msra.mxu1 %v4653_v32 }
 0x110   : > { %3242 = vmatprep.subr.mxu1 %v4425_v3 }
 0x111   : > { %3243 = vmatpush3.msra.mxu1 %v4662_v33 }
 0x112   : > { %3244 = vmatprep.subr.mxu1 %v4425_v3 }
 0x113   : > { %3245 = vmatpush3.msra.mxu1 %v4671_v34 }
 0x114   : > { %3284 = vmatprep.subr.mxu1 %v4425_v3 }
 0x1b4   : > { %v200_v41 = vpop.f32.mrf.mxu1 }
 0x1b5   : > { %v201_v42 = vadd.f32 %v200_v41, %v4733_v40 }
 0x1b6   : > { %v3178_v43 = vpop.f32.mrf.mxu1 }
 0x1b7   : > { %4288 = vtanh.f32 %v201_v42 }
 0x1c4   : > { %v4736_v44 = vpop.eup %4288 }
 0x1c5   : > { %v205_v45 = vmul.f32 0.0625, %v4736_v44 }
 0x1c7   : > { %v206_v46 = vadd.f32 %v4689_v39, %v205_v45 }
 0x1c9   : > { %3212 = vmatmul.mubr.f32.vlgmr.msra.gmra.mxu0 %v206_v46 }
 0x1ca   : > { %3250 = vmatpush3.msra.mxu0 %v4488_v7  ;;  %3281 = vmatprep.mubr.msk.f32.mxu0 %vm4426_vm0, %v4425_v3 }
 0x1cb   : > { %3251 = vmatprep.subr.mxu0 %v4425_v3 }
 0x1cc   : > { %3252 = vmatpush3.msra.mxu0 %v4493_v8 }
 0x1cd   : > { %3253 = vmatprep.subr.mxu0 %v4425_v3 }
 0x1ce   : > { %3254 = vmatpush3.msra.mxu0 %v4504_v10 }
 0x1cf   : > { %3255 = vmatprep.subr.mxu0 %v4425_v3 }
 0x1d0   : > { %3256 = vmatpush3.msra.mxu0 %v4515_v12 }
 0x1d1   : > { %3257 = vmatprep.subr.mxu0 %v4425_v3 }
 0x1d2   : > { %3258 = vmatpush3.msra.mxu0 %v4526_v14 }
 0x1d3   : > { %3259 = vmatprep.subr.mxu0 %v4425_v3 }
 0x1d4   : > { %3260 = vmatpush3.msra.mxu0 %v4537_v16 }
 0x1d5   : > { %3261 = vmatprep.subr.mxu0 %v4425_v3 }
 0x1d6   : > { %3262 = vmatpush3.msra.mxu0 %v4548_v18 }
 0x1d7   : > { %3263 = vmatprep.subr.mxu0 %v4425_v3 }
 0x1d8   : > { %3264 = vmatpush3.msra.mxu0 %v4604_v26 }
 0x1d9   : > { %3265 = vmatprep.subr.mxu0 %v4425_v3 }
 0x1da   : > { %3266 = vmatpush3.msra.mxu0 %v4612_v27 }
 0x1db   : > { %3267 = vmatprep.subr.mxu0 %v4425_v3 }
 0x1dc   : > { %3268 = vmatpush3.msra.mxu0 %v4621_v28 }
 0x1dd   : > { %3269 = vmatprep.subr.mxu0 %v4425_v3 }
 0x1de   : > { %3270 = vmatpush3.msra.mxu0 %v4626_v29 }
 0x1df   : > { %3271 = vmatprep.subr.mxu0 %v4425_v3 }
 0x1e0   : > { %3272 = vmatpush3.msra.mxu0 %v4635_v30 }
 0x1e1   : > { %3273 = vmatprep.subr.mxu0 %v4425_v3 }
 0x1e2   : > { %3274 = vmatpush3.msra.mxu0 %v4644_v31 }
 0x1e3   : > { %3275 = vmatprep.subr.mxu0 %v4425_v3 }
 0x1e4   : > { %3276 = vmatpush3.msra.mxu0 %v4653_v32 }
 0x1e5   : > { %3277 = vmatprep.subr.mxu0 %v4425_v3 }
 0x1e6   : > { %3278 = vmatpush3.msra.mxu0 %v4662_v33 }
 0x1e7   : > { %3279 = vmatprep.subr.mxu0 %v4425_v3 }
 0x1e8   : > { %3280 = vmatpush3.msra.mxu0 %v4671_v34 }
 0x1e9   : > { %3319 = vmatprep.subr.mxu0 %v4425_v3 }
 0x289   : > { %v273_v47 = vpop.f32.mrf.mxu0 }
 0x28a   : > { %v274_v48 = vadd.f32 %v273_v47, %v4733_v40 }
 0x28b   : > { %v3213_v49 = vpop.f32.mrf.mxu0 }
 0x28c   : > { %4290 = vtanh.f32 %v274_v48 }
 0x299   : > { %v4291_v50 = vpop.eup %4290 }
 0x29a   : > { %v278_v51 = vmul.f32 0.0625, %v4291_v50  ;;  %v424_v56 = vmul.f32 2.0, %v4291_v50 }
 0x29c   : > { %v279_v52 = vadd.f32 %v4689_v39, %v278_v51  ;;  %v425_v58 = vadd.f32 %v4736_v44, %v424_v56  ;;  %v5045_v56 = vld [vmem:[%s6010_s3 + $0x78] sm:$0xff] }
 0x29e   : > { %3247 = vmatmul.mubr.f32.vlgmr.msra.gmra.mxu1 %v279_v52 }
 0x29f   : > { %3285 = vmatpush3.msra.mxu1 %v4488_v7  ;;  %3316 = vmatprep.mubr.msk.f32.mxu1 %vm4426_vm0, %v4425_v3 }
 0x2a0   : > { %3286 = vmatprep.subr.mxu1 %v4425_v3 }
 0x2a1   : > { %3287 = vmatpush3.msra.mxu1 %v4493_v8 }
 0x2a2   : > { %3288 = vmatprep.subr.mxu1 %v4425_v3 }
 0x2a3   : > { %3289 = vmatpush3.msra.mxu1 %v4504_v10 }
 0x2a4   : > { %3290 = vmatprep.subr.mxu1 %v4425_v3 }
 0x2a5   : > { %3291 = vmatpush3.msra.mxu1 %v4515_v12 }
 0x2a6   : > { %3292 = vmatprep.subr.mxu1 %v4425_v3 }
 0x2a7   : > { %3293 = vmatpush3.msra.mxu1 %v4526_v14 }
 0x2a8   : > { %3294 = vmatprep.subr.mxu1 %v4425_v3 }
 0x2a9   : > { %3295 = vmatpush3.msra.mxu1 %v4537_v16 }
 0x2aa   : > { %3296 = vmatprep.subr.mxu1 %v4425_v3 }
 0x2ab   : > { %3297 = vmatpush3.msra.mxu1 %v4548_v18 }
 0x2ac   : > { %3298 = vmatprep.subr.mxu1 %v4425_v3 }
 0x2ad   : > { %3299 = vmatpush3.msra.mxu1 %v4604_v26 }
 0x2ae   : > { %3300 = vmatprep.subr.mxu1 %v4425_v3 }
 0x2af   : > { %3301 = vmatpush3.msra.mxu1 %v4612_v27 }
 0x2b0   : > { %3302 = vmatprep.subr.mxu1 %v4425_v3 }
 0x2b1   : > { %3303 = vmatpush3.msra.mxu1 %v4621_v28 }
 0x2b2   : > { %3304 = vmatprep.subr.mxu1 %v4425_v3 }
 0x2b3   : > { %3305 = vmatpush3.msra.mxu1 %v4626_v29 }
 0x2b4   : > { %3306 = vmatprep.subr.mxu1 %v4425_v3 }
 0x2b5   : > { %3307 = vmatpush3.msra.mxu1 %v4635_v30 }
 0x2b6   : > { %3308 = vmatprep.subr.mxu1 %v4425_v3 }
 0x2b7   : > { %3309 = vmatpush3.msra.mxu1 %v4644_v31 }
 0x2b8   : > { %3310 = vmatprep.subr.mxu1 %v4425_v3 }
 0x2b9   : > { %3311 = vmatpush3.msra.mxu1 %v4653_v32 }
 0x2ba   : > { %3312 = vmatprep.subr.mxu1 %v4425_v3 }
 0x2bb   : > { %3313 = vmatpush3.msra.mxu1 %v4662_v33 }
 0x2bc   : > { %3314 = vmatprep.subr.mxu1 %v4425_v3 }
 0x2bd   : > { %3315 = vmatpush3.msra.mxu1 %v4671_v34 }
 0x2be   : > { %3354 = vmatprep.subr.mxu1 %v4425_v3 }
 0x35e   : > { %v346_v53 = vpop.f32.mrf.mxu1 }
 0x35f   : > { %v347_v54 = vadd.f32 %v346_v53, %v4733_v40 }
 0x360   : > { %v3248_v55 = vpop.f32.mrf.mxu1 }
 0x361   : > { %4292 = vtanh.f32 %v347_v54 }
 0x36e   : > { %v4293_v57 = vpop.eup %4292 }
 0x36f   : > { %v426_v59 = vmul.f32 2.0, %v4293_v57  ;;  %v351_v60 = vmul.f32 0.125, %v4293_v57  ;;  %v5054_v57 = vld [vmem:[%s6010_s3 + $0x70] sm:$0xff] }
 0x371   : > { %v352_v61 = vadd.f32 %v4689_v39, %v351_v60  ;;  %v427_v62 = vadd.f32 %v426_v59, %v425_v58  ;;  %v5061_v58 = vld [vmem:[%s6010_s3 + $0x68] sm:$0xff] }
 0x373   : > { %3282 = vmatmul.mubr.f32.vlgmr.msra.gmra.mxu0 %v352_v61  ;;  %v5104_v61 = vld [vmem:[%s6010_s3 + $0x60] sm:$0xff] }
 0x374   : > { %3320 = vmatpush3.msra.mxu0 %v4488_v7  ;;  %3351 = vmatprep.mubr.msk.f32.mxu0 %vm4426_vm0, %v4425_v3 }
 0x375   : > { %3321 = vmatprep.subr.mxu0 %v4425_v3 }
 0x376   : > { %3322 = vmatpush3.msra.mxu0 %v4493_v8 }
 0x377   : > { %3323 = vmatprep.subr.mxu0 %v4425_v3 }
 0x378   : > { %3324 = vmatpush3.msra.mxu0 %v4504_v10 }
 0x379   : > { %3325 = vmatprep.subr.mxu0 %v4425_v3 }
 0x37a   : > { %3326 = vmatpush3.msra.mxu0 %v4515_v12 }
 0x37b   : > { %3327 = vmatprep.subr.mxu0 %v4425_v3 }
 0x37c   : > { %3328 = vmatpush3.msra.mxu0 %v4526_v14 }
 0x37d   : > { %3329 = vmatprep.subr.mxu0 %v4425_v3 }
 0x37e   : > { %3330 = vmatpush3.msra.mxu0 %v4537_v16 }
 0x37f   : > { %3331 = vmatprep.subr.mxu0 %v4425_v3 }
 0x380   : > { %3332 = vmatpush3.msra.mxu0 %v4548_v18 }
 0x381   : > { %3333 = vmatprep.subr.mxu0 %v4425_v3 }
 0x382   : > { %3334 = vmatpush3.msra.mxu0 %v4604_v26 }
 0x383   : > { %3335 = vmatprep.subr.mxu0 %v4425_v3 }
 0x384   : > { %3336 = vmatpush3.msra.mxu0 %v4612_v27 }
 0x385   : > { %3337 = vmatprep.subr.mxu0 %v4425_v3 }
 0x386   : > { %3338 = vmatpush3.msra.mxu0 %v4621_v28 }
 0x387   : > { %3339 = vmatprep.subr.mxu0 %v4425_v3 }
 0x388   : > { %3340 = vmatpush3.msra.mxu0 %v4626_v29 }
 0x389   : > { %3341 = vmatprep.subr.mxu0 %v4425_v3 }
 0x38a   : > { %3342 = vmatpush3.msra.mxu0 %v4635_v30 }
 0x38b   : > { %3343 = vmatprep.subr.mxu0 %v4425_v3 }
 0x38c   : > { %3344 = vmatpush3.msra.mxu0 %v4644_v31 }
 0x38d   : > { %3345 = vmatprep.subr.mxu0 %v4425_v3 }
 0x38e   : > { %3346 = vmatpush3.msra.mxu0 %v4653_v32 }
 0x38f   : > { %3347 = vmatprep.subr.mxu0 %v4425_v3 }
 0x390   : > { %3348 = vmatpush3.msra.mxu0 %v4662_v33 }
 0x391   : > { %3349 = vmatprep.subr.mxu0 %v4425_v3 }
 0x392   : > { %3350 = vmatpush3.msra.mxu0 %v4671_v34 }
 0x393   : > { %3389 = vmatprep.subr.mxu0 %v4425_v3 }
 0x433   : > { %v419_v63 = vpop.f32.mrf.mxu0 }
 0x434   : > { %v420_v0 = vadd.f32 %v419_v63, %v4733_v40  ;;  %v5118_v63 = vld [vmem:[%s6010_s3 + $0x50] sm:$0xff] }
 0x435   : > { %v3283_v1 = vpop.f32.mrf.mxu0 }
 0x436   : > { %4294 = vtanh.f32 %v420_v0  ;;  %v5125_v0 = vld [vmem:[%s6010_s3 + $0x48] sm:$0xff] }
 0x443   : > { %v4295_v2 = vpop.eup %4294 }
 0x444   : > { %v428_v4 = vadd.f32 %v4295_v2, %v427_v62  ;;  %v5111_v62 = vld [vmem:[%s6010_s3 + $0x58] sm:$0xff] }
 0x446   : > { %v429_v5 = vmul.f32 0.020833334, %v428_v4  ;;  %v5176_v4 = vld [vmem:[%s6010_s3 + $0x38] sm:$0xff] }
 0x448   : > { %v4849_v6 = vadd.f32 %v4689_v39, %v429_v5  ;;  %v5183_v5 = vld [vmem:[%s6010_s3 + $0x30] sm:$0xff] }
 0x44a   : > { %3317 = vmatmul.mubr.f32.vlgmr.msra.gmra.mxu1 %v4849_v6 }
 0x44b   : > { %3355 = vmatpush3.msra.mxu1 %v4488_v7  ;;  %3386 = vmatprep.mubr.msk.f32.mxu1 %vm4426_vm0, %v4425_v3 }
 0x44c   : > { %3356 = vmatprep.subr.mxu1 %v4425_v3 }
 0x44d   : > { %3357 = vmatpush3.msra.mxu1 %v4493_v8 }
 0x44e   : > { %3358 = vmatprep.subr.mxu1 %v4425_v3 }
 0x44f   : > { %3359 = vmatpush3.msra.mxu1 %v4504_v10 }
 0x450   : > { %3360 = vmatprep.subr.mxu1 %v4425_v3 }
 0x451   : > { %3361 = vmatpush3.msra.mxu1 %v4515_v12 }
 0x452   : > { %3362 = vmatprep.subr.mxu1 %v4425_v3 }
 0x453   : > { %3363 = vmatpush3.msra.mxu1 %v4526_v14 }
 0x454   : > { %3364 = vmatprep.subr.mxu1 %v4425_v3 }
 0x455   : > { %3365 = vmatpush3.msra.mxu1 %v4537_v16 }
 0x456   : > { %3366 = vmatprep.subr.mxu1 %v4425_v3 }
 0x457   : > { %3367 = vmatpush3.msra.mxu1 %v4548_v18 }
 0x458   : > { %3368 = vmatprep.subr.mxu1 %v4425_v3 }
 0x459   : > { %3369 = vmatpush3.msra.mxu1 %v4604_v26 }
 0x45a   : > { %3370 = vmatprep.subr.mxu1 %v4425_v3 }
 0x45b   : > { %3371 = vmatpush3.msra.mxu1 %v4612_v27 }
 0x45c   : > { %3372 = vmatprep.subr.mxu1 %v4425_v3 }
 0x45d   : > { %3373 = vmatpush3.msra.mxu1 %v4621_v28 }
 0x45e   : > { %3374 = vmatprep.subr.mxu1 %v4425_v3 }
 0x45f   : > { %3375 = vmatpush3.msra.mxu1 %v4626_v29 }
 0x460   : > { %3376 = vmatprep.subr.mxu1 %v4425_v3 }
 0x461   : > { %3377 = vmatpush3.msra.mxu1 %v4635_v30 }
 0x462   : > { %3378 = vmatprep.subr.mxu1 %v4425_v3 }
 0x463   : > { %3379 = vmatpush3.msra.mxu1 %v4644_v31 }
 0x464   : > { %3380 = vmatprep.subr.mxu1 %v4425_v3 }
 0x465   : > { %3381 = vmatpush3.msra.mxu1 %v4653_v32 }
 0x466   : > { %3382 = vmatprep.subr.mxu1 %v4425_v3 }
 0x467   : > { %3383 = vmatpush3.msra.mxu1 %v4662_v33 }
 0x468   : > { %3384 = vmatprep.subr.mxu1 %v4425_v3 }
 0x469   : > { %3385 = vmatpush3.msra.mxu1 %v4671_v34 }
 0x46a   : > { %3424 = vmatprep.subr.mxu1 %v4425_v3 }
 0x50a   : > { %v497_v9 = vpop.f32.mrf.mxu1 }
 0x50b   : > { %v498_v11 = vadd.f32 %v497_v9, %v4733_v40  ;;  %v5197_v9 = vld [vmem:[%s6010_s3 + $0x20] sm:$0xff] }
 0x50c   : > { %v3318_v13 = vpop.f32.mrf.mxu1 }
 0x50d   : > { %4296 = vtanh.f32 %v498_v11  ;;  %v5204_v11 = vld [vmem:[%s6010_s3 + $0x18] sm:$0xff]  ;;  %v5211_v13 = vld [vmem:[%s6010_s3 + $0x10] sm:$0xff] }
 0x51a   : > { %v4887_v15 = vpop.eup %4296 }
 0x51b   : > { %v502_v17 = vmul.f32 0.0625, %v4887_v15 }
 0x51d   : > { %v503_v19 = vadd.f32 %v502_v17, %v4849_v6  ;;  %v5225_v17 = vld [vmem:[%s6010_s3] sm:$0xff] }
 0x51f   : > { %3352 = vmatmul.mubr.f32.vlgmr.msra.gmra.mxu0 %v503_v19 }
 0x520   : > { %3390 = vmatpush3.msra.mxu0 %v4488_v7  ;;  %3421 = vmatprep.mubr.msk.f32.mxu0 %vm4426_vm0, %v4425_v3 }
 0x521   : > { %3391 = vmatprep.subr.mxu0 %v4425_v3 }
 0x522   : > { %3392 = vmatpush3.msra.mxu0 %v4493_v8 }
 0x523   : > { %3393 = vmatprep.subr.mxu0 %v4425_v3 }
 0x524   : > { %3394 = vmatpush3.msra.mxu0 %v4504_v10 }
 0x525   : > { %3395 = vmatprep.subr.mxu0 %v4425_v3 }
 0x526   : > { %3396 = vmatpush3.msra.mxu0 %v4515_v12 }
 0x527   : > { %3397 = vmatprep.subr.mxu0 %v4425_v3 }
 0x528   : > { %3398 = vmatpush3.msra.mxu0 %v4526_v14 }
 0x529   : > { %3399 = vmatprep.subr.mxu0 %v4425_v3 }
 0x52a   : > { %3400 = vmatpush3.msra.mxu0 %v4537_v16 }
 0x52b   : > { %3401 = vmatprep.subr.mxu0 %v4425_v3 }
 0x52c   : > { %3402 = vmatpush3.msra.mxu0 %v4548_v18 }
 0x52d   : > { %3403 = vmatprep.subr.mxu0 %v4425_v3 }
 0x52e   : > { %3404 = vmatpush3.msra.mxu0 %v4604_v26 }
 0x52f   : > { %3405 = vmatprep.subr.mxu0 %v4425_v3 }
 0x530   : > { %3406 = vmatpush3.msra.mxu0 %v4612_v27 }
 0x531   : > { %3407 = vmatprep.subr.mxu0 %v4425_v3 }
 0x532   : > { %3408 = vmatpush3.msra.mxu0 %v4621_v28 }
 0x533   : > { %3409 = vmatprep.subr.mxu0 %v4425_v3 }
 0x534   : > { %3410 = vmatpush3.msra.mxu0 %v4626_v29 }
 0x535   : > { %3411 = vmatprep.subr.mxu0 %v4425_v3 }
 0x536   : > { %3412 = vmatpush3.msra.mxu0 %v4635_v30 }
 0x537   : > { %3413 = vmatprep.subr.mxu0 %v4425_v3 }
 0x538   : > { %3414 = vmatpush3.msra.mxu0 %v4644_v31 }
 0x539   : > { %3415 = vmatprep.subr.mxu0 %v4425_v3 }
 0x53a   : > { %3416 = vmatpush3.msra.mxu0 %v4653_v32 }
 0x53b   : > { %3417 = vmatprep.subr.mxu0 %v4425_v3 }
 0x53c   : > { %3418 = vmatpush3.msra.mxu0 %v4662_v33 }
 0x53d   : > { %3419 = vmatprep.subr.mxu0 %v4425_v3 }
 0x53e   : > { %3420 = vmatpush3.msra.mxu0 %v4671_v34 }
 0x53f   : > { %3459 = vmatprep.subr.mxu0 %v4425_v3 }
 0x5df   : > { %v570_v20 = vpop.f32.mrf.mxu0 }
 0x5e0   : > { %v571_v21 = vadd.f32 %v570_v20, %v4733_v40 }
 0x5e1   : > { %v3353_v22 = vpop.f32.mrf.mxu0 }
 0x5e2   : > { %4298 = vtanh.f32 %v571_v21 }
 0x5ef   : > { %v4299_v23 = vpop.eup %4298 }
 0x5f0   : > { %v575_v24 = vmul.f32 0.0625, %v4299_v23  ;;  %v721_v38 = vmul.f32 2.0, %v4299_v23 }
 0x5f2   : > { %v576_v25 = vadd.f32 %v575_v24, %v4849_v6  ;;  %v722_v41 = vadd.f32 %v4887_v15, %v721_v38  ;;  %v5218_v15 = vld [vmem:[%s6010_s3 + $0x8] sm:$0xff] }
 0x5f4   : > { %3387 = vmatmul.mubr.f32.vlgmr.msra.gmra.mxu1 %v576_v25 }
 0x5f5   : > { %3425 = vmatpush3.msra.mxu1 %v4488_v7  ;;  %3456 = vmatprep.mubr.msk.f32.mxu1 %vm4426_vm0, %v4425_v3 }
 0x5f6   : > { %3426 = vmatprep.subr.mxu1 %v4425_v3 }
 0x5f7   : > { %3427 = vmatpush3.msra.mxu1 %v4493_v8 }
 0x5f8   : > { %3428 = vmatprep.subr.mxu1 %v4425_v3 }
 0x5f9   : > { %3429 = vmatpush3.msra.mxu1 %v4504_v10 }
 0x5fa   : > { %3430 = vmatprep.subr.mxu1 %v4425_v3 }
 0x5fb   : > { %3431 = vmatpush3.msra.mxu1 %v4515_v12 }
 0x5fc   : > { %3432 = vmatprep.subr.mxu1 %v4425_v3 }
 0x5fd   : > { %3433 = vmatpush3.msra.mxu1 %v4526_v14 }
 0x5fe   : > { %3434 = vmatprep.subr.mxu1 %v4425_v3 }
 0x5ff   : > { %3435 = vmatpush3.msra.mxu1 %v4537_v16 }
 0x600   : > { %3436 = vmatprep.subr.mxu1 %v4425_v3 }
 0x601   : > { %3437 = vmatpush3.msra.mxu1 %v4548_v18 }
 0x602   : > { %3438 = vmatprep.subr.mxu1 %v4425_v3 }
 0x603   : > { %3439 = vmatpush3.msra.mxu1 %v4604_v26 }
 0x604   : > { %3440 = vmatprep.subr.mxu1 %v4425_v3 }
 0x605   : > { %3441 = vmatpush3.msra.mxu1 %v4612_v27 }
 0x606   : > { %3442 = vmatprep.subr.mxu1 %v4425_v3 }
 0x607   : > { %3443 = vmatpush3.msra.mxu1 %v4621_v28 }
 0x608   : > { %3444 = vmatprep.subr.mxu1 %v4425_v3 }
 0x609   : > { %3445 = vmatpush3.msra.mxu1 %v4626_v29 }
 0x60a   : > { %3446 = vmatprep.subr.mxu1 %v4425_v3 }
 0x60b   : > { %3447 = vmatpush3.msra.mxu1 %v4635_v30 }
 0x60c   : > { %3448 = vmatprep.subr.mxu1 %v4425_v3 }
 0x60d   : > { %3449 = vmatpush3.msra.mxu1 %v4644_v31 }
 0x60e   : > { %3450 = vmatprep.subr.mxu1 %v4425_v3 }
 0x60f   : > { %3451 = vmatpush3.msra.mxu1 %v4653_v32 }
 0x610   : > { %3452 = vmatprep.subr.mxu1 %v4425_v3 }
 0x611   : > { %3453 = vmatpush3.msra.mxu1 %v4662_v33 }
 0x612   : > { %3454 = vmatprep.subr.mxu1 %v4425_v3 }
 0x613   : > { %3455 = vmatpush3.msra.mxu1 %v4671_v34 }
 0x614   : > { %3494 = vmatprep.subr.mxu1 %v4425_v3 }
 0x6b4   : > { %v643_v35 = vpop.f32.mrf.mxu1 }
 0x6b5   : > { %v644_v36 = vadd.f32 %v643_v35, %v4733_v40 }
 0x6b6   : > { %v3388_v37 = vpop.f32.mrf.mxu1 }
 0x6b7   : > { %4300 = vtanh.f32 %v644_v36 }
 0x6c4   : > { %v4301_v39 = vpop.eup %4300 }
 0x6c5   : > { %v723_v42 = vmul.f32 2.0, %v4301_v39  ;;  %v648_v43 = vmul.f32 0.125, %v4301_v39 }
 0x6c7   : > { %v649_v44 = vadd.f32 %v648_v43, %v4849_v6  ;;  %v724_v45 = vadd.f32 %v723_v42, %v722_v41  ;;  %v5308_v42 = vld [vmem:[%s4730_s10] sm:$0xff] }
 0x6c9   : > { %3422 = vmatmul.mubr.f32.vlgmr.msra.gmra.mxu0 %v649_v44 }
 0x6ca   : > { %3460 = vmatpush3.msra.mxu0 %v4488_v7  ;;  %3491 = vmatprep.mubr.msk.f32.mxu0 %vm4426_vm0, %v4425_v3 }
 0x6cb   : > { %3461 = vmatprep.subr.mxu0 %v4425_v3 }
 0x6cc   : > { %3462 = vmatpush3.msra.mxu0 %v4493_v8 }
 0x6cd   : > { %3463 = vmatprep.subr.mxu0 %v4425_v3 }
 0x6ce   : > { %3464 = vmatpush3.msra.mxu0 %v4504_v10 }
 0x6cf   : > { %3465 = vmatprep.subr.mxu0 %v4425_v3 }
 0x6d0   : > { %3466 = vmatpush3.msra.mxu0 %v4515_v12 }
 0x6d1   : > { %3467 = vmatprep.subr.mxu0 %v4425_v3 }
 0x6d2   : > { %3468 = vmatpush3.msra.mxu0 %v4526_v14 }
 0x6d3   : > { %3469 = vmatprep.subr.mxu0 %v4425_v3 }
 0x6d4   : > { %3470 = vmatpush3.msra.mxu0 %v4537_v16 }
 0x6d5   : > { %3471 = vmatprep.subr.mxu0 %v4425_v3 }
 0x6d6   : > { %3472 = vmatpush3.msra.mxu0 %v4548_v18 }
 0x6d7   : > { %3473 = vmatprep.subr.mxu0 %v4425_v3 }
 0x6d8   : > { %3474 = vmatpush3.msra.mxu0 %v4604_v26 }
 0x6d9   : > { %3475 = vmatprep.subr.mxu0 %v4425_v3 }
 0x6da   : > { %3476 = vmatpush3.msra.mxu0 %v4612_v27 }
 0x6db   : > { %3477 = vmatprep.subr.mxu0 %v4425_v3 }
 0x6dc   : > { %3478 = vmatpush3.msra.mxu0 %v4621_v28 }
 0x6dd   : > { %3479 = vmatprep.subr.mxu0 %v4425_v3 }
 0x6de   : > { %3480 = vmatpush3.msra.mxu0 %v4626_v29 }
 0x6df   : > { %3481 = vmatprep.subr.mxu0 %v4425_v3 }
 0x6e0   : > { %3482 = vmatpush3.msra.mxu0 %v4635_v30 }
 0x6e1   : > { %3483 = vmatprep.subr.mxu0 %v4425_v3 }
 0x6e2   : > { %3484 = vmatpush3.msra.mxu0 %v4644_v31 }
 0x6e3   : > { %3485 = vmatprep.subr.mxu0 %v4425_v3 }
 0x6e4   : > { %3486 = vmatpush3.msra.mxu0 %v4653_v32 }
 0x6e5   : > { %3487 = vmatprep.subr.mxu0 %v4425_v3 }
 0x6e6   : > { %3488 = vmatpush3.msra.mxu0 %v4662_v33 }
 0x6e7   : > { %3489 = vmatprep.subr.mxu0 %v4425_v3 }
 0x6e8   : > { %3490 = vmatpush3.msra.mxu0 %v4671_v34 }
 0x6e9   : > { %3529 = vmatprep.subr.mxu0 %v4425_v3 }
 0x789   : > { %v716_v46 = vpop.f32.mrf.mxu0 }
 0x78a   : > { %v717_v47 = vadd.f32 %v716_v46, %v4733_v40 }
 0x78b   : > { %v3423_v48 = vpop.f32.mrf.mxu0 }
 0x78c   : > { %4302 = vtanh.f32 %v717_v47 }
 0x799   : > { %v4303_v49 = vpop.eup %4302 }
 0x79a   : > { %v725_v50 = vadd.f32 %v4303_v49, %v724_v45 }
 0x79c   : > { %v726_v51 = vmul.f32 0.020833334, %v725_v50 }
 0x79e   : > { %v5000_v52 = vadd.f32 %v726_v51, %v4849_v6  ;;  %v5190_v6 = vld [vmem:[%s6010_s3 + $0x28] sm:$0xff] }
 0x7a0   : > { %3457 = vmatmul.mubr.f32.vlgmr.msra.gmra.mxu1 %v5000_v52 }
 0x7a1   : > { %3495 = vmatpush3.msra.mxu1 %v4488_v7  ;;  %3526 = vmatprep.mubr.msk.f32.mxu1 %vm4426_vm0, %v4425_v3 }
 0x7a2   : > { %3496 = vmatprep.subr.mxu1 %v4425_v3 }
 0x7a3   : > { %3497 = vmatpush3.msra.mxu1 %v4493_v8 }
 0x7a4   : > { %3498 = vmatprep.subr.mxu1 %v4425_v3 }
 0x7a5   : > { %3499 = vmatpush3.msra.mxu1 %v4504_v10 }
 0x7a6   : > { %3500 = vmatprep.subr.mxu1 %v4425_v3 }
 0x7a7   : > { %3501 = vmatpush3.msra.mxu1 %v4515_v12 }
 0x7a8   : > { %3502 = vmatprep.subr.mxu1 %v4425_v3 }
 0x7a9   : > { %3503 = vmatpush3.msra.mxu1 %v4526_v14 }
 0x7aa   : > { %3504 = vmatprep.subr.mxu1 %v4425_v3 }
 0x7ab   : > { %3505 = vmatpush3.msra.mxu1 %v4537_v16 }
 0x7ac   : > { %3506 = vmatprep.subr.mxu1 %v4425_v3 }
 0x7ad   : > { %3507 = vmatpush3.msra.mxu1 %v4548_v18 }
 0x7ae   : > { %3508 = vmatprep.subr.mxu1 %v4425_v3 }
 0x7af   : > { %3509 = vmatpush3.msra.mxu1 %v4604_v26 }
 0x7b0   : > { %3510 = vmatprep.subr.mxu1 %v4425_v3 }
 0x7b1   : > { %3511 = vmatpush3.msra.mxu1 %v4612_v27 }
 0x7b2   : > { %3512 = vmatprep.subr.mxu1 %v4425_v3 }
 0x7b3   : > { %3513 = vmatpush3.msra.mxu1 %v4621_v28 }
 0x7b4   : > { %3514 = vmatprep.subr.mxu1 %v4425_v3 }
 0x7b5   : > { %3515 = vmatpush3.msra.mxu1 %v4626_v29 }
 0x7b6   : > { %3516 = vmatprep.subr.mxu1 %v4425_v3 }
 0x7b7   : > { %3517 = vmatpush3.msra.mxu1 %v4635_v30 }
 0x7b8   : > { %3518 = vmatprep.subr.mxu1 %v4425_v3 }
 0x7b9   : > { %3519 = vmatpush3.msra.mxu1 %v4644_v31 }
 0x7ba   : > { %3520 = vmatprep.subr.mxu1 %v4425_v3 }
 0x7bb   : > { %3521 = vmatpush3.msra.mxu1 %v4653_v32 }
 0x7bc   : > { %3522 = vmatprep.subr.mxu1 %v4425_v3 }
 0x7bd   : > { %3523 = vmatpush3.msra.mxu1 %v4662_v33 }
 0x7be   : > { %3524 = vmatprep.subr.mxu1 %v4425_v3 }
 0x7bf   : > { %3525 = vmatpush3.msra.mxu1 %v4671_v34 }
 0x7c0   : > { %3564 = vmatprep.subr.mxu1 %v4425_v3 }
 0x860   : > { %v794_v7 = vpop.f32.mrf.mxu1 }
 0x861   : > { %v795_v8 = vadd.f32 %v794_v7, %v4733_v40 }
 0x862   : > { %v3458_v10 = vpop.f32.mrf.mxu1 }
 0x863   : > { %4304 = vtanh.f32 %v795_v8 }
 0x870   : > { %v5038_v53 = vpop.eup %4304 }
 0x871   : > { %v799_v54 = vmul.f32 0.0625, %v5038_v53 }
 0x873   : > { %v800_v55 = vadd.f32 %v799_v54, %v5000_v52 }
 0x875   : > { %3492 = vmatmul.mubr.f32.vlgmr.msra.gmra.mxu0 %v800_v55 }
 0x876   : > { %3530 = vmatpush3.msra.mxu0 %v5045_v56  ;;  %3561 = vmatprep.mubr.msk.f32.mxu0 %vm4426_vm0, %v4425_v3 }
 0x877   : > { %3531 = vmatprep.subr.mxu0 %v4425_v3 }
 0x878   : > { %3532 = vmatpush3.msra.mxu0 %v5054_v57 }
 0x879   : > { %3533 = vmatprep.subr.mxu0 %v4425_v3 }
 0x87a   : > { %3534 = vmatpush3.msra.mxu0 %v5061_v58 }
 0x87b   : > { %3535 = vmatprep.subr.mxu0 %v4425_v3 }
 0x87c   : > { %3536 = vmatpush3.msra.mxu0 %v4515_v12 }
 0x87d   : > { %3537 = vmatprep.subr.mxu0 %v4425_v3 }
 0x87e   : > { %3538 = vmatpush3.msra.mxu0 %v4526_v14 }
 0x87f   : > { %3539 = vmatprep.subr.mxu0 %v4425_v3 }
 0x880   : > { %3540 = vmatpush3.msra.mxu0 %v4537_v16 }
 0x881   : > { %3541 = vmatprep.subr.mxu0 %v4425_v3 }
 0x882   : > { %3542 = vmatpush3.msra.mxu0 %v4548_v18 }
 0x883   : > { %3543 = vmatprep.subr.mxu0 %v4425_v3 }
 0x884   : > { %3544 = vmatpush3.msra.mxu0 %v4604_v26 }
 0x885   : > { %3545 = vmatprep.subr.mxu0 %v4425_v3 }
 0x886   : > { %3546 = vmatpush3.msra.mxu0 %v4612_v27 }
 0x887   : > { %3547 = vmatprep.subr.mxu0 %v4425_v3 }
 0x888   : > { %3548 = vmatpush3.msra.mxu0 %v4621_v28 }
 0x889   : > { %3549 = vmatprep.subr.mxu0 %v4425_v3 }
 0x88a   : > { %3550 = vmatpush3.msra.mxu0 %v4626_v29 }
 0x88b   : > { %3551 = vmatprep.subr.mxu0 %v4425_v3 }
 0x88c   : > { %3552 = vmatpush3.msra.mxu0 %v4635_v30 }
 0x88d   : > { %3553 = vmatprep.subr.mxu0 %v4425_v3 }
 0x88e   : > { %3554 = vmatpush3.msra.mxu0 %v4644_v31 }
 0x88f   : > { %3555 = vmatprep.subr.mxu0 %v4425_v3 }
 0x890   : > { %3556 = vmatpush3.msra.mxu0 %v4653_v32 }
 0x891   : > { %3557 = vmatprep.subr.mxu0 %v4425_v3 }
 0x892   : > { %3558 = vmatpush3.msra.mxu0 %v4662_v33 }
 0x893   : > { %3559 = vmatprep.subr.mxu0 %v4425_v3 }
 0x894   : > { %3560 = vmatpush3.msra.mxu0 %v4671_v34 }
 0x895   : > { %3599 = vmatprep.subr.mxu0 %v4425_v3 }
 0x935   : > { %v867_v12 = vpop.f32.mrf.mxu0 }
 0x936   : > { %v868_v14 = vadd.f32 %v867_v12, %v4733_v40 }
 0x937   : > { %v3493_v16 = vpop.f32.mrf.mxu0 }
 0x938   : > { %4306 = vtanh.f32 %v868_v14 }
 0x945   : > { %v4307_v18 = vpop.eup %4306 }
 0x946   : > { %v872_v59 = vmul.f32 0.0625, %v4307_v18 }
 0x948   : > { %v873_v60 = vadd.f32 %v872_v59, %v5000_v52 }
 0x94a   : > { %3527 = vmatmul.mubr.f32.vlgmr.msra.gmra.mxu1 %v873_v60 }
 0x94b   : > { %3565 = vmatpush3.msra.mxu1 %v5045_v56  ;;  %3596 = vmatprep.mubr.msk.f32.mxu1 %vm4426_vm0, %v4425_v3 }
 0x94c   : > { %3566 = vmatprep.subr.mxu1 %v4425_v3 }
 0x94d   : > { %3567 = vmatpush3.msra.mxu1 %v5054_v57 }
 0x94e   : > { %3568 = vmatprep.subr.mxu1 %v4425_v3 }
 0x94f   : > { %3569 = vmatpush3.msra.mxu1 %v5061_v58 }
 0x950   : > { %3570 = vmatprep.subr.mxu1 %v4425_v3 }
 0x951   : > { %3571 = vmatpush3.msra.mxu1 %v5104_v61 }
 0x952   : > { %3572 = vmatprep.subr.mxu1 %v4425_v3 }
 0x953   : > { %3573 = vmatpush3.msra.mxu1 %v5111_v62 }
 0x954   : > { %3574 = vmatprep.subr.mxu1 %v4425_v3 }
 0x955   : > { %3575 = vmatpush3.msra.mxu1 %v5118_v63 }
 0x956   : > { %3576 = vmatprep.subr.mxu1 %v4425_v3 }
 0x957   : > { %3577 = vmatpush3.msra.mxu1 %v5125_v0 }
 0x958   : > { %3578 = vmatprep.subr.mxu1 %v4425_v3 }
 0x959   : > { %3579 = vmatpush3.msra.mxu1 %v4604_v26 }
 0x95a   : > { %3580 = vmatprep.subr.mxu1 %v4425_v3 }
 0x95b   : > { %3581 = vmatpush3.msra.mxu1 %v4612_v27 }
 0x95c   : > { %3582 = vmatprep.subr.mxu1 %v4425_v3 }
 0x95d   : > { %3583 = vmatpush3.msra.mxu1 %v4621_v28 }
 0x95e   : > { %3584 = vmatprep.subr.mxu1 %v4425_v3 }
 0x95f   : > { %3585 = vmatpush3.msra.mxu1 %v4626_v29  ;;  %v1018_v29 = vmul.f32 2.0, %v4307_v18 }
 0x960   : > { %3586 = vmatprep.subr.mxu1 %v4425_v3 }
 0x961   : > { %3587 = vmatpush3.msra.mxu1 %v4635_v30 }
 0x962   : > { %3588 = vmatprep.subr.mxu1 %v4425_v3 }
 0x963   : > { %3589 = vmatpush3.msra.mxu1 %v4644_v31  ;;  %v1019_v31 = vadd.f32 %v5038_v53, %v1018_v29 }
 0x964   : > { %3590 = vmatprep.subr.mxu1 %v4425_v3 }
 0x965   : > { %3591 = vmatpush3.msra.mxu1 %v4653_v32 }
 0x966   : > { %3592 = vmatprep.subr.mxu1 %v4425_v3 }
 0x967   : > { %3593 = vmatpush3.msra.mxu1 %v4662_v33 }
 0x968   : > { %3594 = vmatprep.subr.mxu1 %v4425_v3 }
 0x969   : > { %3595 = vmatpush3.msra.mxu1 %v4671_v34  ;;  %v5169_v34 = vld [vmem:[%s6010_s3 + $0x40] sm:$0xff] }
 0x96a   : > { %3634 = vmatprep.subr.mxu1 %v4425_v3 }
 0xa0a   : > { %v940_v26 = vpop.f32.mrf.mxu1 }
 0xa0b   : > { %v941_v27 = vadd.f32 %v940_v26, %v4733_v40 }
 0xa0c   : > { %v3528_v28 = vpop.f32.mrf.mxu1 }
 0xa0d   : > { %4308 = vtanh.f32 %v941_v27 }
 0xa1a   : > { %v4309_v30 = vpop.eup %4308 }
 0xa1b   : > { %v1020_v32 = vmul.f32 2.0, %v4309_v30  ;;  %v945_v1 = vmul.f32 0.125, %v4309_v30 }
 0xa1d   : > { %v946_v2 = vadd.f32 %v945_v1, %v5000_v52  ;;  %v1021_v33 = vadd.f32 %v1020_v32, %v1019_v31 }
 0xa1f   : > { %3562 = vmatmul.mubr.f32.vlgmr.msra.gmra.mxu0 %v946_v2 }
 0xa20   : > { %3600 = vmatpush3.msra.mxu0 %v5045_v56  ;;  %3631 = vmatprep.mubr.msk.f32.mxu0 %vm4426_vm0, %v4425_v3 }
 0xa21   : > { %3601 = vmatprep.subr.mxu0 %v4425_v3 }
 0xa22   : > { %3602 = vmatpush3.msra.mxu0 %v5054_v57 }
 0xa23   : > { %3603 = vmatprep.subr.mxu0 %v4425_v3 }
 0xa24   : > { %3604 = vmatpush3.msra.mxu0 %v5061_v58 }
 0xa25   : > { %3605 = vmatprep.subr.mxu0 %v4425_v3 }
 0xa26   : > { %3606 = vmatpush3.msra.mxu0 %v5104_v61 }
 0xa27   : > { %3607 = vmatprep.subr.mxu0 %v4425_v3 }
 0xa28   : > { %3608 = vmatpush3.msra.mxu0 %v5111_v62 }
 0xa29   : > { %3609 = vmatprep.subr.mxu0 %v4425_v3 }
 0xa2a   : > { %3610 = vmatpush3.msra.mxu0 %v5118_v63 }
 0xa2b   : > { %3611 = vmatprep.subr.mxu0 %v4425_v3 }
 0xa2c   : > { %3612 = vmatpush3.msra.mxu0 %v5125_v0 }
 0xa2d   : > { %3613 = vmatprep.subr.mxu0 %v4425_v3 }
 0xa2e   : > { %3614 = vmatpush3.msra.mxu0 %v5169_v34 }
 0xa2f   : > { %3615 = vmatprep.subr.mxu0 %v4425_v3 }
 0xa30   : > { %3616 = vmatpush3.msra.mxu0 %v5176_v4 }
 0xa31   : > { %3617 = vmatprep.subr.mxu0 %v4425_v3 }
 0xa32   : > { %3618 = vmatpush3.msra.mxu0 %v5183_v5 }
 0xa33   : > { %3619 = vmatprep.subr.mxu0 %v4425_v3 }
 0xa34   : > { %3620 = vmatpush3.msra.mxu0 %v5190_v6 }
 0xa35   : > { %3621 = vmatprep.subr.mxu0 %v4425_v3 }
 0xa36   : > { %3622 = vmatpush3.msra.mxu0 %v5197_v9 }
 0xa37   : > { %3623 = vmatprep.subr.mxu0 %v4425_v3 }
 0xa38   : > { %3624 = vmatpush3.msra.mxu0 %v5204_v11 }
 0xa39   : > { %3625 = vmatprep.subr.mxu0 %v4425_v3 }
 0xa3a   : > { %3626 = vmatpush3.msra.mxu0 %v5211_v13 }
 0xa3b   : > { %3627 = vmatprep.subr.mxu0 %v4425_v3 }
 0xa3c   : > { %3628 = vmatpush3.msra.mxu0 %v5218_v15 }
 0xa3d   : > { %3629 = vmatprep.subr.mxu0 %v4425_v3 }
 0xa3e   : > { %3630 = vmatpush3.msra.mxu0 %v5225_v17 }
 0xa3f   : > { %3669 = vmatprep.subr.mxu0 %v4425_v3 }
 0xadf   : > { %v1013_v19 = vpop.f32.mrf.mxu0 }
 0xae0   : > { %v1014_v20 = vadd.f32 %v1013_v19, %v4733_v40 }
 0xae1   : > { %v3563_v21 = vpop.f32.mrf.mxu0 }
 0xae2   : > { %4310 = vtanh.f32 %v1014_v20 }
 0xaef   : > { %v4311_v22 = vpop.eup %4310 }
 0xaf0   : > { %v1022_v23 = vadd.f32 %v4311_v22, %v1021_v33 }
 0xaf2   : > { %v1023_v24 = vmul.f32 0.020833334, %v1022_v23 }
 0xaf4   : > { %v5231_v25 = vadd.f32 %v1023_v24, %v5000_v52 }
 0xaf6   : > { %3597 = vmatmul.mubr.f32.vlgmr.msra.gmra.mxu1 %v5231_v25 }
 0xaf7   : > { %3635 = vmatpush3.msra.mxu1 %v5045_v56  ;;  %3666 = vmatprep.mubr.msk.f32.mxu1 %vm4426_vm0, %v4425_v3 }
 0xaf8   : > { %3636 = vmatprep.subr.mxu1 %v4425_v3 }
 0xaf9   : > { %3637 = vmatpush3.msra.mxu1 %v5054_v57 }
 0xafa   : > { %3638 = vmatprep.subr.mxu1 %v4425_v3 }
 0xafb   : > { %3639 = vmatpush3.msra.mxu1 %v5061_v58 }
 0xafc   : > { %3640 = vmatprep.subr.mxu1 %v4425_v3 }
 0xafd   : > { %3641 = vmatpush3.msra.mxu1 %v5104_v61 }
 0xafe   : > { %3642 = vmatprep.subr.mxu1 %v4425_v3 }
 0xaff   : > { %3643 = vmatpush3.msra.mxu1 %v5111_v62 }
 0xb00   : > { %3644 = vmatprep.subr.mxu1 %v4425_v3 }
 0xb01   : > { %3645 = vmatpush3.msra.mxu1 %v5118_v63 }
 0xb02   : > { %3646 = vmatprep.subr.mxu1 %v4425_v3 }
 0xb03   : > { %3647 = vmatpush3.msra.mxu1 %v5125_v0 }
 0xb04   : > { %3648 = vmatprep.subr.mxu1 %v4425_v3 }
 0xb05   : > { %3649 = vmatpush3.msra.mxu1 %v5169_v34 }
 0xb06   : > { %3650 = vmatprep.subr.mxu1 %v4425_v3 }
 0xb07   : > { %3651 = vmatpush3.msra.mxu1 %v5176_v4 }
 0xb08   : > { %3652 = vmatprep.subr.mxu1 %v4425_v3 }
 0xb09   : > { %3653 = vmatpush3.msra.mxu1 %v5183_v5 }
 0xb0a   : > { %3654 = vmatprep.subr.mxu1 %v4425_v3 }
 0xb0b   : > { %3655 = vmatpush3.msra.mxu1 %v5190_v6 }
 0xb0c   : > { %3656 = vmatprep.subr.mxu1 %v4425_v3 }
 0xb0d   : > { %3657 = vmatpush3.msra.mxu1 %v5197_v9 }
 0xb0e   : > { %3658 = vmatprep.subr.mxu1 %v4425_v3 }
 0xb0f   : > { %3659 = vmatpush3.msra.mxu1 %v5204_v11 }
 0xb10   : > { %3660 = vmatprep.subr.mxu1 %v4425_v3 }
 0xb11   : > { %3661 = vmatpush3.msra.mxu1 %v5211_v13 }
 0xb12   : > { %3662 = vmatprep.subr.mxu1 %v4425_v3 }
 0xb13   : > { %3663 = vmatpush3.msra.mxu1 %v5218_v15 }
 0xb14   : > { %3664 = vmatprep.subr.mxu1 %v4425_v3 }
 0xb15   : > { %3665 = vmatpush3.msra.mxu1 %v5225_v17 }
 0xb16   : > { %3704 = vmatprep.subr.mxu1 %v4425_v3 }
 0xbb6   : > { %v1091_v35 = vpop.f32.mrf.mxu1 }
 0xbb7   : > { %v1092_v36 = vadd.f32 %v1091_v35, %v4733_v40 }
 0xbb8   : > { %v3598_v37 = vpop.f32.mrf.mxu1 }
 0xbb9   : > { %4312 = vtanh.f32 %v1092_v36 }
 0xbc6   : > { %v5269_v38 = vpop.eup %4312 }
 0xbc7   : > { %v1096_v39 = vmul.f32 0.0625, %v5269_v38 }
 0xbc9   : > { %v1097_v41 = vadd.f32 %v1096_v39, %v5231_v25 }
 0xbcb   : > { %3632 = vmatmul.mubr.f32.vlgmr.msra.gmra.mxu0 %v1097_v41 }
 0xbcc   : > { %3670 = vmatpush3.msra.mxu0 %v5045_v56  ;;  %3701 = vmatprep.mubr.msk.f32.mxu0 %vm4426_vm0, %v4425_v3 }
 0xbcd   : > { %3671 = vmatprep.subr.mxu0 %v4425_v3 }
 0xbce   : > { %3672 = vmatpush3.msra.mxu0 %v5054_v57 }
 0xbcf   : > { %3673 = vmatprep.subr.mxu0 %v4425_v3 }
 0xbd0   : > { %3674 = vmatpush3.msra.mxu0 %v5061_v58 }
 0xbd1   : > { %3675 = vmatprep.subr.mxu0 %v4425_v3 }
 0xbd2   : > { %3676 = vmatpush3.msra.mxu0 %v5104_v61 }
 0xbd3   : > { %3677 = vmatprep.subr.mxu0 %v4425_v3 }
 0xbd4   : > { %3678 = vmatpush3.msra.mxu0 %v5111_v62 }
 0xbd5   : > { %3679 = vmatprep.subr.mxu0 %v4425_v3 }
 0xbd6   : > { %3680 = vmatpush3.msra.mxu0 %v5118_v63 }
 0xbd7   : > { %3681 = vmatprep.subr.mxu0 %v4425_v3 }
 0xbd8   : > { %3682 = vmatpush3.msra.mxu0 %v5125_v0 }
 0xbd9   : > { %3683 = vmatprep.subr.mxu0 %v4425_v3 }
 0xbda   : > { %3684 = vmatpush3.msra.mxu0 %v5169_v34 }
 0xbdb   : > { %3685 = vmatprep.subr.mxu0 %v4425_v3 }
 0xbdc   : > { %3686 = vmatpush3.msra.mxu0 %v5176_v4 }
 0xbdd   : > { %3687 = vmatprep.subr.mxu0 %v4425_v3 }
 0xbde   : > { %3688 = vmatpush3.msra.mxu0 %v5183_v5 }
 0xbdf   : > { %3689 = vmatprep.subr.mxu0 %v4425_v3 }
 0xbe0   : > { %3690 = vmatpush3.msra.mxu0 %v5190_v6 }
 0xbe1   : > { %3691 = vmatprep.subr.mxu0 %v4425_v3 }
 0xbe2   : > { %3692 = vmatpush3.msra.mxu0 %v5197_v9 }
 0xbe3   : > { %3693 = vmatprep.subr.mxu0 %v4425_v3 }
 0xbe4   : > { %3694 = vmatpush3.msra.mxu0 %v5204_v11 }
 0xbe5   : > { %3695 = vmatprep.subr.mxu0 %v4425_v3 }
 0xbe6   : > { %3696 = vmatpush3.msra.mxu0 %v5211_v13 }
 0xbe7   : > { %3697 = vmatprep.subr.mxu0 %v4425_v3 }
 0xbe8   : > { %3698 = vmatpush3.msra.mxu0 %v5218_v15 }
 0xbe9   : > { %3699 = vmatprep.subr.mxu0 %v4425_v3 }
 0xbea   : > { %3700 = vmatpush3.msra.mxu0 %v5225_v17 }
 0xbeb   : > { %3739 = vmatprep.subr.mxu0 %v4425_v3 }
 0xc8b   : > { %v1164_v40 = vpop.f32.mrf.mxu0 }
 0xc8c   : > { %v1165_v43 = vadd.f32 %v5308_v42, %v1164_v40 }
 0xc8d   : > { %v3633_v44 = vpop.f32.mrf.mxu0 }
 0xc8e   : > { %4314 = vtanh.f32 %v1165_v43 }
 0xc9b   : > { %v4315_v45 = vpop.eup %4314 }
 0xc9c   : > { %v1169_v46 = vmul.f32 0.0625, %v4315_v45  ;;  %v1315_v51 = vmul.f32 2.0, %v4315_v45 }
 0xc9e   : > { %v1170_v47 = vadd.f32 %v1169_v46, %v5231_v25  ;;  %v1316_v7 = vadd.f32 %v5269_v38, %v1315_v51 }
 0xca0   : > { %3667 = vmatmul.mubr.f32.vlgmr.msra.gmra.mxu1 %v1170_v47 }
 0xca1   : > { %3705 = vmatpush3.msra.mxu1 %v5045_v56  ;;  %3736 = vmatprep.mubr.msk.f32.mxu1 %vm4426_vm0, %v4425_v3 }
 0xca2   : > { %3706 = vmatprep.subr.mxu1 %v4425_v3 }
 0xca3   : > { %3707 = vmatpush3.msra.mxu1 %v5054_v57 }
 0xca4   : > { %3708 = vmatprep.subr.mxu1 %v4425_v3 }
 0xca5   : > { %3709 = vmatpush3.msra.mxu1 %v5061_v58 }
 0xca6   : > { %3710 = vmatprep.subr.mxu1 %v4425_v3 }
 0xca7   : > { %3711 = vmatpush3.msra.mxu1 %v5104_v61 }
 0xca8   : > { %3712 = vmatprep.subr.mxu1 %v4425_v3 }
 0xca9   : > { %3713 = vmatpush3.msra.mxu1 %v5111_v62 }
 0xcaa   : > { %3714 = vmatprep.subr.mxu1 %v4425_v3 }
 0xcab   : > { %3715 = vmatpush3.msra.mxu1 %v5118_v63 }
 0xcac   : > { %3716 = vmatprep.subr.mxu1 %v4425_v3 }
 0xcad   : > { %3717 = vmatpush3.msra.mxu1 %v5125_v0 }
 0xcae   : > { %3718 = vmatprep.subr.mxu1 %v4425_v3 }
 0xcaf   : > { %3719 = vmatpush3.msra.mxu1 %v5169_v34 }
 0xcb0   : > { %3720 = vmatprep.subr.mxu1 %v4425_v3 }
 0xcb1   : > { %3721 = vmatpush3.msra.mxu1 %v5176_v4 }
 0xcb2   : > { %3722 = vmatprep.subr.mxu1 %v4425_v3 }
 0xcb3   : > { %3723 = vmatpush3.msra.mxu1 %v5183_v5 }
 0xcb4   : > { %3724 = vmatprep.subr.mxu1 %v4425_v3 }
 0xcb5   : > { %3725 = vmatpush3.msra.mxu1 %v5190_v6 }
 0xcb6   : > { %3726 = vmatprep.subr.mxu1 %v4425_v3 }
 0xcb7   : > { %3727 = vmatpush3.msra.mxu1 %v5197_v9 }
 0xcb8   : > { %3728 = vmatprep.subr.mxu1 %v4425_v3 }
 0xcb9   : > { %3729 = vmatpush3.msra.mxu1 %v5204_v11 }
 0xcba   : > { %3730 = vmatprep.subr.mxu1 %v4425_v3 }
 0xcbb   : > { %3731 = vmatpush3.msra.mxu1 %v5211_v13 }
 0xcbc   : > { %3732 = vmatprep.subr.mxu1 %v4425_v3 }
 0xcbd   : > { %3733 = vmatpush3.msra.mxu1 %v5218_v15 }
 0xcbe   : > { %3734 = vmatprep.subr.mxu1 %v4425_v3 }
 0xcbf   : > { %3735 = vmatpush3.msra.mxu1 %v5225_v17 }
 0xcc0   : > { %3774 = vmatprep.subr.mxu1 %v4425_v3 }
 0xd60   : > { %v1237_v48 = vpop.f32.mrf.mxu1 }
 0xd61   : > { %v1238_v49 = vadd.f32 %v5308_v42, %v1237_v48 }
 0xd62   : > { %v3668_v50 = vpop.f32.mrf.mxu1 }
 0xd63   : > { %4316 = vtanh.f32 %v1238_v49 }
 0xd70   : > { %v4317_v52 = vpop.eup %4316 }
 0xd71   : > { %v1317_v8 = vmul.f32 2.0, %v4317_v52  ;;  %v1242_v10 = vmul.f32 0.125, %v4317_v52 }
 0xd73   : > { %v1243_v53 = vadd.f32 %v1242_v10, %v5231_v25  ;;  %v1318_v54 = vadd.f32 %v1317_v8, %v1316_v7 }
 0xd75   : > { %3702 = vmatmul.mubr.f32.vlgmr.msra.gmra.mxu0 %v1243_v53 }
 0xd76   : > { %3740 = vmatpush3.msra.mxu0 %v5045_v56  ;;  %3771 = vmatprep.mubr.msk.f32.mxu0 %vm4426_vm0, %v4425_v3 }
 0xd77   : > { %3741 = vmatprep.subr.mxu0 %v4425_v3 }
 0xd78   : > { %3742 = vmatpush3.msra.mxu0 %v5054_v57 }
 0xd79   : > { %3743 = vmatprep.subr.mxu0 %v4425_v3 }
 0xd7a   : > { %3744 = vmatpush3.msra.mxu0 %v5061_v58 }
 0xd7b   : > { %3745 = vmatprep.subr.mxu0 %v4425_v3 }
 0xd7c   : > { %3746 = vmatpush3.msra.mxu0 %v5104_v61 }
 0xd7d   : > { %3747 = vmatprep.subr.mxu0 %v4425_v3 }
 0xd7e   : > { %3748 = vmatpush3.msra.mxu0 %v5111_v62 }
 0xd7f   : > { %3749 = vmatprep.subr.mxu0 %v4425_v3 }
 0xd80   : > { %3750 = vmatpush3.msra.mxu0 %v5118_v63 }
 0xd81   : > { %3751 = vmatprep.subr.mxu0 %v4425_v3 }
 0xd82   : > { %3752 = vmatpush3.msra.mxu0 %v5125_v0 }
 0xd83   : > { %3753 = vmatprep.subr.mxu0 %v4425_v3 }
 0xd84   : > { %3754 = vmatpush3.msra.mxu0 %v5169_v34 }
 0xd85   : > { %3755 = vmatprep.subr.mxu0 %v4425_v3 }
 0xd86   : > { %3756 = vmatpush3.msra.mxu0 %v5176_v4 }
 0xd87   : > { %3757 = vmatprep.subr.mxu0 %v4425_v3 }
 0xd88   : > { %3758 = vmatpush3.msra.mxu0 %v5183_v5 }
 0xd89   : > { %3759 = vmatprep.subr.mxu0 %v4425_v3 }
 0xd8a   : > { %3760 = vmatpush3.msra.mxu0 %v5190_v6 }
 0xd8b   : > { %3761 = vmatprep.subr.mxu0 %v4425_v3 }
 0xd8c   : > { %3762 = vmatpush3.msra.mxu0 %v5197_v9 }
 0xd8d   : > { %3763 = vmatprep.subr.mxu0 %v4425_v3 }
 0xd8e   : > { %3764 = vmatpush3.msra.mxu0 %v5204_v11 }
 0xd8f   : > { %3765 = vmatprep.subr.mxu0 %v4425_v3 }
 0xd90   : > { %3766 = vmatpush3.msra.mxu0 %v5211_v13 }
 0xd91   : > { %3767 = vmatprep.subr.mxu0 %v4425_v3 }
 0xd92   : > { %3768 = vmatpush3.msra.mxu0 %v5218_v15 }
 0xd93   : > { %3769 = vmatprep.subr.mxu0 %v4425_v3 }
 0xd94   : > { %3770 = vmatpush3.msra.mxu0 %v5225_v17 }
 0xd95   : > { %3809 = vmatprep.subr.mxu0 %v4425_v3 }
 0xe35   : > { %v1310_v55 = vpop.f32.mrf.mxu0 }
 0xe36   : > { %v1311_v12 = vadd.f32 %v5308_v42, %v1310_v55  ;;  %v5626_v55 = vld [vmem:[%s6010_s3 + $0x70] sm:$0xff] }
 0xe37   : > { %v3703_v14 = vpop.f32.mrf.mxu0 }
 0xe38   : > { %4318 = vtanh.f32 %v1311_v12  ;;  %v5633_v12 = vld [vmem:[%s6010_s3 + $0x68] sm:$0xff] }
 0xe45   : > { %v4319_v16 = vpop.eup %4318 }
 0xe46   : > { %v1319_v18 = vadd.f32 %v4319_v16, %v1318_v54  ;;  %v5617_v54 = vld [vmem:[%s6010_s3 + $0x78] sm:$0xff] }
 0xe48   : > { %v1320_v59 = vmul.f32 0.020833334, %v1319_v18 }
 0xe4a   : > { %v5385_v60 = vadd.f32 %v1320_v59, %v5231_v25 }
 0xe4c   : > { %3737 = vmatmul.mubr.f32.vlgmr.msra.gmra.mxu1 %v5385_v60 }
 0xe4d   : > { %3775 = vmatpush3.msra.mxu1 %v5045_v56  ;;  %3806 = vmatprep.mubr.msk.f32.mxu1 %vm4426_vm0, %v4425_v3 }
 0xe4e   : > { %3776 = vmatprep.subr.mxu1 %v4425_v3 }
 0xe4f   : > { %3777 = vmatpush3.msra.mxu1 %v5054_v57 }
 0xe50   : > { %3778 = vmatprep.subr.mxu1 %v4425_v3 }
 0xe51   : > { %3779 = vmatpush3.msra.mxu1 %v5061_v58 }
 0xe52   : > { %3780 = vmatprep.subr.mxu1 %v4425_v3 }
 0xe53   : > { %3781 = vmatpush3.msra.mxu1 %v5104_v61 }
 0xe54   : > { %3782 = vmatprep.subr.mxu1 %v4425_v3 }
 0xe55   : > { %3783 = vmatpush3.msra.mxu1 %v5111_v62 }
 0xe56   : > { %3784 = vmatprep.subr.mxu1 %v4425_v3 }
 0xe57   : > { %3785 = vmatpush3.msra.mxu1 %v5118_v63 }
 0xe58   : > { %3786 = vmatprep.subr.mxu1 %v4425_v3 }
 0xe59   : > { %3787 = vmatpush3.msra.mxu1 %v5125_v0 }
 0xe5a   : > { %3788 = vmatprep.subr.mxu1 %v4425_v3 }
 0xe5b   : > { %3789 = vmatpush3.msra.mxu1 %v5169_v34 }
 0xe5c   : > { %3790 = vmatprep.subr.mxu1 %v4425_v3 }
 0xe5d   : > { %3791 = vmatpush3.msra.mxu1 %v5176_v4 }
 0xe5e   : > { %3792 = vmatprep.subr.mxu1 %v4425_v3 }
 0xe5f   : > { %3793 = vmatpush3.msra.mxu1 %v5183_v5 }
 0xe60   : > { %3794 = vmatprep.subr.mxu1 %v4425_v3 }
 0xe61   : > { %3795 = vmatpush3.msra.mxu1 %v5190_v6 }
 0xe62   : > { %3796 = vmatprep.subr.mxu1 %v4425_v3 }
 0xe63   : > { %3797 = vmatpush3.msra.mxu1 %v5197_v9 }
 0xe64   : > { %3798 = vmatprep.subr.mxu1 %v4425_v3 }
 0xe65   : > { %3799 = vmatpush3.msra.mxu1 %v5204_v11 }
 0xe66   : > { %3800 = vmatprep.subr.mxu1 %v4425_v3 }
 0xe67   : > { %3801 = vmatpush3.msra.mxu1 %v5211_v13 }
 0xe68   : > { %3802 = vmatprep.subr.mxu1 %v4425_v3 }
 0xe69   : > { %3803 = vmatpush3.msra.mxu1 %v5218_v15 }
 0xe6a   : > { %3804 = vmatprep.subr.mxu1 %v4425_v3 }
 0xe6b   : > { %3805 = vmatpush3.msra.mxu1 %v5225_v17 }
 0xe6c   : > { %3844 = vmatprep.subr.mxu1 %v4425_v3 }
 0xf0c   : > { %v1388_v26 = vpop.f32.mrf.mxu1 }
 0xf0d   : > { %v1389_v27 = vadd.f32 %v5308_v42, %v1388_v26 }
 0xf0e   : > { %v3738_v28 = vpop.f32.mrf.mxu1 }
 0xf0f   : > { %4320 = vtanh.f32 %v1389_v27  ;;  %v5677_v27 = vld [vmem:[%s6010_s3 + $0x60] sm:$0xff]  ;;  %v5684_v28 = vld [vmem:[%s6010_s3 + $0x58] sm:$0xff] }
 0xf1c   : > { %v5423_v29 = vpop.eup %4320 }
 0xf1d   : > { %v1393_v30 = vmul.f32 0.0625, %v5423_v29 }
 0xf1f   : > { %v1394_v31 = vadd.f32 %v1393_v30, %v5385_v60  ;;  %v5698_v30 = vld [vmem:[%s6010_s3 + $0x48] sm:$0xff] }
 0xf21   : > { %3772 = vmatmul.mubr.f32.vlgmr.msra.gmra.mxu0 %v1394_v31  ;;  %v5758_v31 = vld [vmem:[%s6010_s3 + $0x30] sm:$0xff] }
 0xf22   : > { %3810 = vmatpush3.msra.mxu0 %v5045_v56  ;;  %3841 = vmatprep.mubr.msk.f32.mxu0 %vm4426_vm0, %v4425_v3 }
 0xf23   : > { %3811 = vmatprep.subr.mxu0 %v4425_v3 }
 0xf24   : > { %3812 = vmatpush3.msra.mxu0 %v5054_v57 }
 0xf25   : > { %3813 = vmatprep.subr.mxu0 %v4425_v3 }
 0xf26   : > { %3814 = vmatpush3.msra.mxu0 %v5061_v58 }
 0xf27   : > { %3815 = vmatprep.subr.mxu0 %v4425_v3 }
 0xf28   : > { %3816 = vmatpush3.msra.mxu0 %v5104_v61 }
 0xf29   : > { %3817 = vmatprep.subr.mxu0 %v4425_v3 }
 0xf2a   : > { %3818 = vmatpush3.msra.mxu0 %v5111_v62 }
 0xf2b   : > { %3819 = vmatprep.subr.mxu0 %v4425_v3 }
 0xf2c   : > { %3820 = vmatpush3.msra.mxu0 %v5118_v63 }
 0xf2d   : > { %3821 = vmatprep.subr.mxu0 %v4425_v3 }
 0xf2e   : > { %3822 = vmatpush3.msra.mxu0 %v5125_v0 }
 0xf2f   : > { %3823 = vmatprep.subr.mxu0 %v4425_v3 }
 0xf30   : > { %3824 = vmatpush3.msra.mxu0 %v5169_v34 }
 0xf31   : > { %3825 = vmatprep.subr.mxu0 %v4425_v3 }
 0xf32   : > { %3826 = vmatpush3.msra.mxu0 %v5176_v4 }
 0xf33   : > { %3827 = vmatprep.subr.mxu0 %v4425_v3 }
 0xf34   : > { %3828 = vmatpush3.msra.mxu0 %v5183_v5 }
 0xf35   : > { %3829 = vmatprep.subr.mxu0 %v4425_v3 }
 0xf36   : > { %3830 = vmatpush3.msra.mxu0 %v5190_v6 }
 0xf37   : > { %3831 = vmatprep.subr.mxu0 %v4425_v3 }
 0xf38   : > { %3832 = vmatpush3.msra.mxu0 %v5197_v9 }
 0xf39   : > { %3833 = vmatprep.subr.mxu0 %v4425_v3 }
 0xf3a   : > { %3834 = vmatpush3.msra.mxu0 %v5204_v11 }
 0xf3b   : > { %3835 = vmatprep.subr.mxu0 %v4425_v3 }
 0xf3c   : > { %3836 = vmatpush3.msra.mxu0 %v5211_v13 }
 0xf3d   : > { %3837 = vmatprep.subr.mxu0 %v4425_v3 }
 0xf3e   : > { %3838 = vmatpush3.msra.mxu0 %v5218_v15 }
 0xf3f   : > { %3839 = vmatprep.subr.mxu0 %v4425_v3 }
 0xf40   : > { %3840 = vmatpush3.msra.mxu0 %v5225_v17 }
 0xf41   : > { %3879 = vmatprep.subr.mxu0 %v4425_v3 }
 0xfe1   : > { %v1461_v32 = vpop.f32.mrf.mxu0 }
 0xfe2   : > { %v1462_v1 = vadd.f32 %v5308_v42, %v1461_v32  ;;  %v5765_v32 = vld [vmem:[%s6010_s3 + $0x28] sm:$0xff] }
 0xfe3   : > { %v3773_v2 = vpop.f32.mrf.mxu0 }
 0xfe4   : > { %4322 = vtanh.f32 %v1462_v1  ;;  %v5772_v1 = vld [vmem:[%s6010_s3 + $0x20] sm:$0xff]  ;;  %v5779_v2 = vld [vmem:[%s6010_s3 + $0x18] sm:$0xff] }
 0xff1   : > { %v4323_v33 = vpop.eup %4322 }
 0xff2   : > { %v1466_v19 = vmul.f32 0.0625, %v4323_v33  ;;  %v1612_v24 = vmul.f32 2.0, %v4323_v33  ;;  %v5786_v33 = vld [vmem:[%s6010_s3 + $0x10] sm:$0xff] }
 0xff4   : > { %v1467_v20 = vadd.f32 %v1466_v19, %v5385_v60  ;;  %v1613_v35 = vadd.f32 %v5423_v29, %v1612_v24  ;;  %v5691_v29 = vld [vmem:[%s6010_s3 + $0x50] sm:$0xff]  ;;  %v5793_v19 = vld [vmem:[%s6010_s3 + $0x8] sm:$0xff] }
 0xff6   : > { %3807 = vmatmul.mubr.f32.vlgmr.msra.gmra.mxu1 %v1467_v20  ;;  %v5800_v20 = vld [vmem:[%s6010_s3] sm:$0xff] }
 0xff7   : > { %3845 = vmatpush3.msra.mxu1 %v5045_v56  ;;  %3876 = vmatprep.mubr.msk.f32.mxu1 %vm4426_vm0, %v4425_v3 }
 0xff8   : > { %3846 = vmatprep.subr.mxu1 %v4425_v3 }
 0xff9   : > { %3847 = vmatpush3.msra.mxu1 %v5054_v57 }
 0xffa   : > { %3848 = vmatprep.subr.mxu1 %v4425_v3 }
 0xffb   : > { %3849 = vmatpush3.msra.mxu1 %v5061_v58 }
 0xffc   : > { %3850 = vmatprep.subr.mxu1 %v4425_v3 }
 0xffd   : > { %3851 = vmatpush3.msra.mxu1 %v5104_v61 }
 0xffe   : > { %3852 = vmatprep.subr.mxu1 %v4425_v3 }
 0xfff   : > { %3853 = vmatpush3.msra.mxu1 %v5111_v62 }
0x1000   : > { %3854 = vmatprep.subr.mxu1 %v4425_v3 }
0x1001   : > { %3855 = vmatpush3.msra.mxu1 %v5118_v63 }
0x1002   : > { %3856 = vmatprep.subr.mxu1 %v4425_v3 }
0x1003   : > { %3857 = vmatpush3.msra.mxu1 %v5125_v0 }
0x1004   : > { %3858 = vmatprep.subr.mxu1 %v4425_v3 }
0x1005   : > { %3859 = vmatpush3.msra.mxu1 %v5169_v34 }
0x1006   : > { %3860 = vmatprep.subr.mxu1 %v4425_v3 }
0x1007   : > { %3861 = vmatpush3.msra.mxu1 %v5176_v4 }
0x1008   : > { %3862 = vmatprep.subr.mxu1 %v4425_v3 }
0x1009   : > { %3863 = vmatpush3.msra.mxu1 %v5183_v5 }
0x100a   : > { %3864 = vmatprep.subr.mxu1 %v4425_v3 }
0x100b   : > { %3865 = vmatpush3.msra.mxu1 %v5190_v6 }
0x100c   : > { %3866 = vmatprep.subr.mxu1 %v4425_v3 }
0x100d   : > { %3867 = vmatpush3.msra.mxu1 %v5197_v9 }
0x100e   : > { %3868 = vmatprep.subr.mxu1 %v4425_v3 }
0x100f   : > { %3869 = vmatpush3.msra.mxu1 %v5204_v11 }
0x1010   : > { %3870 = vmatprep.subr.mxu1 %v4425_v3 }
0x1011   : > { %3871 = vmatpush3.msra.mxu1 %v5211_v13 }
0x1012   : > { %3872 = vmatprep.subr.mxu1 %v4425_v3 }
0x1013   : > { %3873 = vmatpush3.msra.mxu1 %v5218_v15 }
0x1014   : > { %3874 = vmatprep.subr.mxu1 %v4425_v3 }
0x1015   : > { %3875 = vmatpush3.msra.mxu1 %v5225_v17 }
0x1016   : > { %3914 = vmatprep.subr.mxu1 %v4425_v3 }
0x10b6   : > { %v1534_v21 = vpop.f32.mrf.mxu1 }
0x10b7   : > { %v1535_v22 = vadd.f32 %v5308_v42, %v1534_v21 }
0x10b8   : > { %v3808_v23 = vpop.f32.mrf.mxu1 }
0x10b9   : > { %4324 = vtanh.f32 %v1535_v22 }
0x10c6   : > { %v4325_v25 = vpop.eup %4324 }
0x10c7   : > { %v1614_v36 = vmul.f32 2.0, %v4325_v25  ;;  %v1539_v37 = vmul.f32 0.125, %v4325_v25 }
0x10c9   : > { %v1540_v38 = vadd.f32 %v1539_v37, %v5385_v60  ;;  %v1615_v39 = vadd.f32 %v1614_v36, %v1613_v35 }
0x10cb   : > { %3842 = vmatmul.mubr.f32.vlgmr.msra.gmra.mxu0 %v1540_v38 }
0x10cc   : > { %3880 = vmatpush3.msra.mxu0 %v5045_v56  ;;  %3911 = vmatprep.mubr.msk.f32.mxu0 %vm4426_vm0, %v4425_v3 }
0x10cd   : > { %3881 = vmatprep.subr.mxu0 %v4425_v3 }
0x10ce   : > { %3882 = vmatpush3.msra.mxu0 %v5054_v57 }
0x10cf   : > { %3883 = vmatprep.subr.mxu0 %v4425_v3 }
0x10d0   : > { %3884 = vmatpush3.msra.mxu0 %v5061_v58 }
0x10d1   : > { %3885 = vmatprep.subr.mxu0 %v4425_v3 }
0x10d2   : > { %3886 = vmatpush3.msra.mxu0 %v5104_v61 }
0x10d3   : > { %3887 = vmatprep.subr.mxu0 %v4425_v3 }
0x10d4   : > { %3888 = vmatpush3.msra.mxu0 %v5111_v62 }
0x10d5   : > { %3889 = vmatprep.subr.mxu0 %v4425_v3 }
0x10d6   : > { %3890 = vmatpush3.msra.mxu0 %v5118_v63 }
0x10d7   : > { %3891 = vmatprep.subr.mxu0 %v4425_v3 }
0x10d8   : > { %3892 = vmatpush3.msra.mxu0 %v5125_v0 }
0x10d9   : > { %3893 = vmatprep.subr.mxu0 %v4425_v3 }
0x10da   : > { %3894 = vmatpush3.msra.mxu0 %v5169_v34 }
0x10db   : > { %3895 = vmatprep.subr.mxu0 %v4425_v3 }
0x10dc   : > { %3896 = vmatpush3.msra.mxu0 %v5176_v4 }
0x10dd   : > { %3897 = vmatprep.subr.mxu0 %v4425_v3 }
0x10de   : > { %3898 = vmatpush3.msra.mxu0 %v5183_v5 }
0x10df   : > { %3899 = vmatprep.subr.mxu0 %v4425_v3 }
0x10e0   : > { %3900 = vmatpush3.msra.mxu0 %v5190_v6 }
0x10e1   : > { %3901 = vmatprep.subr.mxu0 %v4425_v3 }
0x10e2   : > { %3902 = vmatpush3.msra.mxu0 %v5197_v9 }
0x10e3   : > { %3903 = vmatprep.subr.mxu0 %v4425_v3 }
0x10e4   : > { %3904 = vmatpush3.msra.mxu0 %v5204_v11 }
0x10e5   : > { %3905 = vmatprep.subr.mxu0 %v4425_v3 }
0x10e6   : > { %3906 = vmatpush3.msra.mxu0 %v5211_v13 }
0x10e7   : > { %3907 = vmatprep.subr.mxu0 %v4425_v3 }
0x10e8   : > { %3908 = vmatpush3.msra.mxu0 %v5218_v15 }
0x10e9   : > { %3909 = vmatprep.subr.mxu0 %v4425_v3 }
0x10ea   : > { %3910 = vmatpush3.msra.mxu0 %v5225_v17 }
0x10eb   : > { %3949 = vmatprep.subr.mxu0 %v4425_v3 }
0x118b   : > { %v1607_v41 = vpop.f32.mrf.mxu0 }
0x118c   : > { %v1608_v40 = vadd.f32 %v5308_v42, %v1607_v41 }
0x118d   : > { %v3843_v43 = vpop.f32.mrf.mxu0 }
0x118e   : > { %4326 = vtanh.f32 %v1608_v40  ;;  %v5880_v43 = vld [vmem:[%s4730_s10] sm:$0xff]  ;;  %s2535_s10 = scalar_lea.vmem [#allocation2], %s4683_s30 }
0x119b   : > { %v4327_v44 = vpop.eup %4326 }
0x119c   : > { %v1616_v45 = vadd.f32 %v4327_v44, %v1615_v39 }
0x119e   : > { %v1617_v46 = vmul.f32 0.020833334, %v1616_v45 }
0x11a0   : > { %v5536_v47 = vadd.f32 %v1617_v46, %v5385_v60 }
0x11a2   : > { %3877 = vmatmul.mubr.f32.vlgmr.msra.gmra.mxu1 %v5536_v47 }
0x11a3   : > { %3915 = vmatpush3.msra.mxu1 %v5045_v56  ;;  %3946 = vmatprep.mubr.msk.f32.mxu1 %vm4426_vm0, %v4425_v3 }
0x11a4   : > { %3916 = vmatprep.subr.mxu1 %v4425_v3 }
0x11a5   : > { %3917 = vmatpush3.msra.mxu1 %v5054_v57 }
0x11a6   : > { %3918 = vmatprep.subr.mxu1 %v4425_v3 }
0x11a7   : > { %3919 = vmatpush3.msra.mxu1 %v5061_v58 }
0x11a8   : > { %3920 = vmatprep.subr.mxu1 %v4425_v3 }
0x11a9   : > { %3921 = vmatpush3.msra.mxu1 %v5104_v61 }
0x11aa   : > { %3922 = vmatprep.subr.mxu1 %v4425_v3 }
0x11ab   : > { %3923 = vmatpush3.msra.mxu1 %v5111_v62 }
0x11ac   : > { %3924 = vmatprep.subr.mxu1 %v4425_v3 }
0x11ad   : > { %3925 = vmatpush3.msra.mxu1 %v5118_v63 }
0x11ae   : > { %3926 = vmatprep.subr.mxu1 %v4425_v3 }
0x11af   : > { %3927 = vmatpush3.msra.mxu1 %v5125_v0 }
0x11b0   : > { %3928 = vmatprep.subr.mxu1 %v4425_v3 }
0x11b1   : > { %3929 = vmatpush3.msra.mxu1 %v5169_v34 }
0x11b2   : > { %3930 = vmatprep.subr.mxu1 %v4425_v3 }
0x11b3   : > { %3931 = vmatpush3.msra.mxu1 %v5176_v4 }
0x11b4   : > { %3932 = vmatprep.subr.mxu1 %v4425_v3 }
0x11b5   : > { %3933 = vmatpush3.msra.mxu1 %v5183_v5 }
0x11b6   : > { %3934 = vmatprep.subr.mxu1 %v4425_v3 }
0x11b7   : > { %3935 = vmatpush3.msra.mxu1 %v5190_v6 }
0x11b8   : > { %3936 = vmatprep.subr.mxu1 %v4425_v3 }
0x11b9   : > { %3937 = vmatpush3.msra.mxu1 %v5197_v9 }
0x11ba   : > { %3938 = vmatprep.subr.mxu1 %v4425_v3 }
0x11bb   : > { %3939 = vmatpush3.msra.mxu1 %v5204_v11 }
0x11bc   : > { %3940 = vmatprep.subr.mxu1 %v4425_v3 }
0x11bd   : > { %3941 = vmatpush3.msra.mxu1 %v5211_v13 }
0x11be   : > { %3942 = vmatprep.subr.mxu1 %v4425_v3 }
0x11bf   : > { %3943 = vmatpush3.msra.mxu1 %v5218_v15 }
0x11c0   : > { %3944 = vmatprep.subr.mxu1 %v4425_v3 }
0x11c1   : > { %3945 = vmatpush3.msra.mxu1 %v5225_v17 }
0x11c2   : > { %3984 = vmatprep.subr.mxu1 %v4425_v3 }
0x1262   : > { %v1685_v48 = vpop.f32.mrf.mxu1 }
0x1263   : > { %v1686_v49 = vadd.f32 %v5308_v42, %v1685_v48 }
0x1264   : > { %v3878_v50 = vpop.f32.mrf.mxu1 }
0x1265   : > { %4328 = vtanh.f32 %v1686_v49 }
0x1272   : > { %v5574_v51 = vpop.eup %4328 }
0x1273   : > { %v1690_v52 = vmul.f32 0.0625, %v5574_v51 }
0x1275   : > { %v1691_v7 = vadd.f32 %v1690_v52, %v5536_v47 }
0x1277   : > { %3912 = vmatmul.mubr.f32.vlgmr.msra.gmra.mxu0 %v1691_v7 }
0x1278   : > { %3950 = vmatpush3.msra.mxu0 %v5045_v56  ;;  %3981 = vmatprep.mubr.msk.f32.mxu0 %vm4426_vm0, %v4425_v3 }
0x1279   : > { %3951 = vmatprep.subr.mxu0 %v4425_v3 }
0x127a   : > { %3952 = vmatpush3.msra.mxu0 %v5054_v57 }
0x127b   : > { %3953 = vmatprep.subr.mxu0 %v4425_v3 }
0x127c   : > { %3954 = vmatpush3.msra.mxu0 %v5061_v58 }
0x127d   : > { %3955 = vmatprep.subr.mxu0 %v4425_v3 }
0x127e   : > { %3956 = vmatpush3.msra.mxu0 %v5104_v61 }
0x127f   : > { %3957 = vmatprep.subr.mxu0 %v4425_v3 }
0x1280   : > { %3958 = vmatpush3.msra.mxu0 %v5111_v62 }
0x1281   : > { %3959 = vmatprep.subr.mxu0 %v4425_v3 }
0x1282   : > { %3960 = vmatpush3.msra.mxu0 %v5118_v63 }
0x1283   : > { %3961 = vmatprep.subr.mxu0 %v4425_v3 }
0x1284   : > { %3962 = vmatpush3.msra.mxu0 %v5125_v0 }
0x1285   : > { %3963 = vmatprep.subr.mxu0 %v4425_v3 }
0x1286   : > { %3964 = vmatpush3.msra.mxu0 %v5169_v34 }
0x1287   : > { %3965 = vmatprep.subr.mxu0 %v4425_v3 }
0x1288   : > { %3966 = vmatpush3.msra.mxu0 %v5176_v4 }
0x1289   : > { %3967 = vmatprep.subr.mxu0 %v4425_v3 }
0x128a   : > { %3968 = vmatpush3.msra.mxu0 %v5183_v5 }
0x128b   : > { %3969 = vmatprep.subr.mxu0 %v4425_v3 }
0x128c   : > { %3970 = vmatpush3.msra.mxu0 %v5190_v6 }
0x128d   : > { %3971 = vmatprep.subr.mxu0 %v4425_v3 }
0x128e   : > { %3972 = vmatpush3.msra.mxu0 %v5197_v9 }
0x128f   : > { %3973 = vmatprep.subr.mxu0 %v4425_v3 }
0x1290   : > { %3974 = vmatpush3.msra.mxu0 %v5204_v11 }
0x1291   : > { %3975 = vmatprep.subr.mxu0 %v4425_v3 }
0x1292   : > { %3976 = vmatpush3.msra.mxu0 %v5211_v13 }
0x1293   : > { %3977 = vmatprep.subr.mxu0 %v4425_v3 }
0x1294   : > { %3978 = vmatpush3.msra.mxu0 %v5218_v15 }
0x1295   : > { %3979 = vmatprep.subr.mxu0 %v4425_v3 }
0x1296   : > { %3980 = vmatpush3.msra.mxu0 %v5225_v17 }
0x1297   : > { %4019 = vmatprep.subr.mxu0 %v4425_v3 }
0x1337   : > { %v1758_v56 = vpop.f32.mrf.mxu0 }
0x1338   : > { %v1759_v57 = vadd.f32 %v5308_v42, %v1758_v56 }
0x1339   : > { %v3913_v58 = vpop.f32.mrf.mxu0 }
0x133a   : > { %4330 = vtanh.f32 %v1759_v57 }
0x1347   : > { %v4331_v8 = vpop.eup %4330 }
0x1348   : > { %v1763_v10 = vmul.f32 0.0625, %v4331_v8 }
0x134a   : > { %v1764_v53 = vadd.f32 %v1763_v10, %v5536_v47 }
0x134c   : > { %3947 = vmatmul.mubr.f32.vlgmr.msra.gmra.mxu1 %v1764_v53 }
0x134d   : > { %3985 = vmatpush3.msra.mxu1 %v5617_v54  ;;  %4016 = vmatprep.mubr.msk.f32.mxu1 %vm4426_vm0, %v4425_v3 }
0x134e   : > { %3986 = vmatprep.subr.mxu1 %v4425_v3 }
0x134f   : > { %3987 = vmatpush3.msra.mxu1 %v5626_v55 }
0x1350   : > { %3988 = vmatprep.subr.mxu1 %v4425_v3 }
0x1351   : > { %3989 = vmatpush3.msra.mxu1 %v5633_v12 }
0x1352   : > { %3990 = vmatprep.subr.mxu1 %v4425_v3 }
0x1353   : > { %3991 = vmatpush3.msra.mxu1 %v5104_v61 }
0x1354   : > { %3992 = vmatprep.subr.mxu1 %v4425_v3 }
0x1355   : > { %3993 = vmatpush3.msra.mxu1 %v5111_v62 }
0x1356   : > { %3994 = vmatprep.subr.mxu1 %v4425_v3 }
0x1357   : > { %3995 = vmatpush3.msra.mxu1 %v5118_v63 }
0x1358   : > { %3996 = vmatprep.subr.mxu1 %v4425_v3 }
0x1359   : > { %3997 = vmatpush3.msra.mxu1 %v5125_v0  ;;  %v1909_v0 = vmul.f32 2.0, %v4331_v8 }
0x135a   : > { %3998 = vmatprep.subr.mxu1 %v4425_v3 }
0x135b   : > { %3999 = vmatpush3.msra.mxu1 %v5169_v34  ;;  %v1910_v16 = vadd.f32 %v5574_v51, %v1909_v0 }
0x135c   : > { %4000 = vmatprep.subr.mxu1 %v4425_v3 }
0x135d   : > { %4001 = vmatpush3.msra.mxu1 %v5176_v4 }
0x135e   : > { %4002 = vmatprep.subr.mxu1 %v4425_v3 }
0x135f   : > { %4003 = vmatpush3.msra.mxu1 %v5183_v5 }
0x1360   : > { %4004 = vmatprep.subr.mxu1 %v4425_v3 }
0x1361   : > { %4005 = vmatpush3.msra.mxu1 %v5190_v6 }
0x1362   : > { %4006 = vmatprep.subr.mxu1 %v4425_v3 }
0x1363   : > { %4007 = vmatpush3.msra.mxu1 %v5197_v9 }
0x1364   : > { %4008 = vmatprep.subr.mxu1 %v4425_v3 }
0x1365   : > { %4009 = vmatpush3.msra.mxu1 %v5204_v11 }
0x1366   : > { %4010 = vmatprep.subr.mxu1 %v4425_v3 }
0x1367   : > { %4011 = vmatpush3.msra.mxu1 %v5211_v13 }
0x1368   : > { %4012 = vmatprep.subr.mxu1 %v4425_v3 }
0x1369   : > { %4013 = vmatpush3.msra.mxu1 %v5218_v15 }
0x136a   : > { %4014 = vmatprep.subr.mxu1 %v4425_v3 }
0x136b   : > { %4015 = vmatpush3.msra.mxu1 %v5225_v17 }
0x136c   : > { %4054 = vmatprep.subr.mxu1 %v4425_v3 }
0x140c   : > { %v1831_v61 = vpop.f32.mrf.mxu1 }
0x140d   : > { %v1832_v62 = vadd.f32 %v5308_v42, %v1831_v61 }
0x140e   : > { %v3948_v63 = vpop.f32.mrf.mxu1 }
0x140f   : > { %4332 = vtanh.f32 %v1832_v62 }
0x141c   : > { %v4333_v14 = vpop.eup %4332 }
0x141d   : > { %v1911_v18 = vmul.f32 2.0, %v4333_v14  ;;  %v1836_v59 = vmul.f32 0.125, %v4333_v14 }
0x141f   : > { %v1837_v60 = vadd.f32 %v1836_v59, %v5536_v47  ;;  %v1912_v26 = vadd.f32 %v1911_v18, %v1910_v16 }
0x1421   : > { %3982 = vmatmul.mubr.f32.vlgmr.msra.gmra.mxu0 %v1837_v60 }
0x1422   : > { %4020 = vmatpush3.msra.mxu0 %v5617_v54  ;;  %4051 = vmatprep.mubr.msk.f32.mxu0 %vm4426_vm0, %v4425_v3 }
0x1423   : > { %4021 = vmatprep.subr.mxu0 %v4425_v3 }
0x1424   : > { %4022 = vmatpush3.msra.mxu0 %v5626_v55 }
0x1425   : > { %4023 = vmatprep.subr.mxu0 %v4425_v3 }
0x1426   : > { %4024 = vmatpush3.msra.mxu0 %v5633_v12 }
0x1427   : > { %4025 = vmatprep.subr.mxu0 %v4425_v3 }
0x1428   : > { %4026 = vmatpush3.msra.mxu0 %v5677_v27 }
0x1429   : > { %4027 = vmatprep.subr.mxu0 %v4425_v3 }
0x142a   : > { %4028 = vmatpush3.msra.mxu0 %v5684_v28 }
0x142b   : > { %4029 = vmatprep.subr.mxu0 %v4425_v3 }
0x142c   : > { %4030 = vmatpush3.msra.mxu0 %v5691_v29 }
0x142d   : > { %4031 = vmatprep.subr.mxu0 %v4425_v3 }
0x142e   : > { %4032 = vmatpush3.msra.mxu0 %v5698_v30 }
0x142f   : > { %4033 = vmatprep.subr.mxu0 %v4425_v3 }
0x1430   : > { %4034 = vmatpush3.msra.mxu0 %v5169_v34 }
0x1431   : > { %4035 = vmatprep.subr.mxu0 %v4425_v3 }
0x1432   : > { %4036 = vmatpush3.msra.mxu0 %v5176_v4 }
0x1433   : > { %4037 = vmatprep.subr.mxu0 %v4425_v3 }
0x1434   : > { %4038 = vmatpush3.msra.mxu0 %v5183_v5 }
0x1435   : > { %4039 = vmatprep.subr.mxu0 %v4425_v3 }
0x1436   : > { %4040 = vmatpush3.msra.mxu0 %v5190_v6 }
0x1437   : > { %4041 = vmatprep.subr.mxu0 %v4425_v3 }
0x1438   : > { %4042 = vmatpush3.msra.mxu0 %v5197_v9 }
0x1439   : > { %4043 = vmatprep.subr.mxu0 %v4425_v3 }
0x143a   : > { %4044 = vmatpush3.msra.mxu0 %v5204_v11 }
0x143b   : > { %4045 = vmatprep.subr.mxu0 %v4425_v3 }
0x143c   : > { %4046 = vmatpush3.msra.mxu0 %v5211_v13 }
0x143d   : > { %4047 = vmatprep.subr.mxu0 %v4425_v3 }
0x143e   : > { %4048 = vmatpush3.msra.mxu0 %v5218_v15  ;;  %v5744_v15 = vld [vmem:[%s6010_s3 + $0x40] sm:$0xff] }
0x143f   : > { %4049 = vmatprep.subr.mxu0 %v4425_v3 }
0x1440   : > { %4050 = vmatpush3.msra.mxu0 %v5225_v17  ;;  %v5751_v17 = vld [vmem:[%s6010_s3 + $0x38] sm:$0xff] }
0x1441   : > { %4089 = vmatprep.subr.mxu0 %v4425_v3 }
0x14e1   : > { %v1904_v34 = vpop.f32.mrf.mxu0 }
0x14e2   : > { %v1905_v4 = vadd.f32 %v5308_v42, %v1904_v34 }
0x14e3   : > { %v3983_v5 = vpop.f32.mrf.mxu0 }
0x14e4   : > { %4334 = vtanh.f32 %v1905_v4 }
0x14f1   : > { %v4335_v6 = vpop.eup %4334 }
0x14f2   : > { %v1913_v9 = vadd.f32 %v4335_v6, %v1912_v26 }
0x14f4   : > { %v1914_v11 = vmul.f32 0.020833334, %v1913_v9 }
0x14f6   : > { %v5722_v13 = vadd.f32 %v1914_v11, %v5536_v47 }
0x14f8   : > { %4017 = vmatmul.mubr.f32.vlgmr.msra.gmra.mxu1 %v5722_v13 }
0x14f9   : > { %4055 = vmatpush3.msra.mxu1 %v5617_v54  ;;  %4086 = vmatprep.mubr.msk.f32.mxu1 %vm4426_vm0, %v4425_v3 }
0x14fa   : > { %4056 = vmatprep.subr.mxu1 %v4425_v3 }
0x14fb   : > { %4057 = vmatpush3.msra.mxu1 %v5626_v55 }
0x14fc   : > { %4058 = vmatprep.subr.mxu1 %v4425_v3 }
0x14fd   : > { %4059 = vmatpush3.msra.mxu1 %v5633_v12 }
0x14fe   : > { %4060 = vmatprep.subr.mxu1 %v4425_v3 }
0x14ff   : > { %4061 = vmatpush3.msra.mxu1 %v5677_v27 }
0x1500   : > { %4062 = vmatprep.subr.mxu1 %v4425_v3 }
0x1501   : > { %4063 = vmatpush3.msra.mxu1 %v5684_v28 }
0x1502   : > { %4064 = vmatprep.subr.mxu1 %v4425_v3 }
0x1503   : > { %4065 = vmatpush3.msra.mxu1 %v5691_v29 }
0x1504   : > { %4066 = vmatprep.subr.mxu1 %v4425_v3 }
0x1505   : > { %4067 = vmatpush3.msra.mxu1 %v5698_v30 }
0x1506   : > { %4068 = vmatprep.subr.mxu1 %v4425_v3 }
0x1507   : > { %4069 = vmatpush3.msra.mxu1 %v5744_v15 }
0x1508   : > { %4070 = vmatprep.subr.mxu1 %v4425_v3 }
0x1509   : > { %4071 = vmatpush3.msra.mxu1 %v5751_v17 }
0x150a   : > { %4072 = vmatprep.subr.mxu1 %v4425_v3 }
0x150b   : > { %4073 = vmatpush3.msra.mxu1 %v5758_v31 }
0x150c   : > { %4074 = vmatprep.subr.mxu1 %v4425_v3 }
0x150d   : > { %4075 = vmatpush3.msra.mxu1 %v5765_v32 }
0x150e   : > { %4076 = vmatprep.subr.mxu1 %v4425_v3 }
0x150f   : > { %4077 = vmatpush3.msra.mxu1 %v5772_v1 }
0x1510   : > { %4078 = vmatprep.subr.mxu1 %v4425_v3 }
0x1511   : > { %4079 = vmatpush3.msra.mxu1 %v5779_v2 }
0x1512   : > { %4080 = vmatprep.subr.mxu1 %v4425_v3 }
0x1513   : > { %4081 = vmatpush3.msra.mxu1 %v5786_v33 }
0x1514   : > { %4082 = vmatprep.subr.mxu1 %v4425_v3 }
0x1515   : > { %4083 = vmatpush3.msra.mxu1 %v5793_v19 }
0x1516   : > { %4084 = vmatprep.subr.mxu1 %v4425_v3 }
0x1517   : > { %4085 = vmatpush3.msra.mxu1 %v5800_v20 }
0x1518   : > { %4124 = vmatprep.subr.mxu1 %v4425_v3 }
0x15b8   : > { %v1982_v21 = vpop.f32.mrf.mxu1 }
0x15b9   : > { %v1983_v22 = vadd.f32 %v5308_v42, %v1982_v21 }
0x15ba   : > { %v4018_v23 = vpop.f32.mrf.mxu1 }
0x15bb   : > { %4336 = vtanh.f32 %v1983_v22 }
0x15c8   : > { %v5805_v24 = vpop.eup %4336 }
0x15c9   : > { %v1987_v25 = vmul.f32 0.0625, %v5805_v24 }
0x15cb   : > { %v1988_v35 = vadd.f32 %v1987_v25, %v5722_v13 }
0x15cd   : > { %4052 = vmatmul.mubr.f32.vlgmr.msra.gmra.mxu0 %v1988_v35 }
0x15ce   : > { %4090 = vmatpush3.msra.mxu0 %v5617_v54  ;;  %4121 = vmatprep.mubr.msk.f32.mxu0 %vm4426_vm0, %v4425_v3 }
0x15cf   : > { %4091 = vmatprep.subr.mxu0 %v4425_v3 }
0x15d0   : > { %4092 = vmatpush3.msra.mxu0 %v5626_v55 }
0x15d1   : > { %4093 = vmatprep.subr.mxu0 %v4425_v3 }
0x15d2   : > { %4094 = vmatpush3.msra.mxu0 %v5633_v12 }
0x15d3   : > { %4095 = vmatprep.subr.mxu0 %v4425_v3 }
0x15d4   : > { %4096 = vmatpush3.msra.mxu0 %v5677_v27 }
0x15d5   : > { %4097 = vmatprep.subr.mxu0 %v4425_v3 }
0x15d6   : > { %4098 = vmatpush3.msra.mxu0 %v5684_v28 }
0x15d7   : > { %4099 = vmatprep.subr.mxu0 %v4425_v3 }
0x15d8   : > { %4100 = vmatpush3.msra.mxu0 %v5691_v29 }
0x15d9   : > { %4101 = vmatprep.subr.mxu0 %v4425_v3 }
0x15da   : > { %4102 = vmatpush3.msra.mxu0 %v5698_v30 }
0x15db   : > { %4103 = vmatprep.subr.mxu0 %v4425_v3 }
0x15dc   : > { %4104 = vmatpush3.msra.mxu0 %v5744_v15 }
0x15dd   : > { %4105 = vmatprep.subr.mxu0 %v4425_v3 }
0x15de   : > { %4106 = vmatpush3.msra.mxu0 %v5751_v17 }
0x15df   : > { %4107 = vmatprep.subr.mxu0 %v4425_v3 }
0x15e0   : > { %4108 = vmatpush3.msra.mxu0 %v5758_v31 }
0x15e1   : > { %4109 = vmatprep.subr.mxu0 %v4425_v3 }
0x15e2   : > { %4110 = vmatpush3.msra.mxu0 %v5765_v32 }
0x15e3   : > { %4111 = vmatprep.subr.mxu0 %v4425_v3 }
0x15e4   : > { %4112 = vmatpush3.msra.mxu0 %v5772_v1 }
0x15e5   : > { %4113 = vmatprep.subr.mxu0 %v4425_v3 }
0x15e6   : > { %4114 = vmatpush3.msra.mxu0 %v5779_v2 }
0x15e7   : > { %4115 = vmatprep.subr.mxu0 %v4425_v3 }
0x15e8   : > { %4116 = vmatpush3.msra.mxu0 %v5786_v33 }
0x15e9   : > { %4117 = vmatprep.subr.mxu0 %v4425_v3 }
0x15ea   : > { %4118 = vmatpush3.msra.mxu0 %v5793_v19 }
0x15eb   : > { %4119 = vmatprep.subr.mxu0 %v4425_v3 }
0x15ec   : > { %4120 = vmatpush3.msra.mxu0 %v5800_v20 }
0x15ed   : > { %4159 = vmatprep.subr.mxu0 %v4425_v3 }
0x168d   : > { %v2055_v36 = vpop.f32.mrf.mxu0 }
0x168e   : > { %v2056_v37 = vadd.f32 %v5308_v42, %v2055_v36 }
0x168f   : > { %v4053_v38 = vpop.f32.mrf.mxu0 }
0x1690   : > { %4338 = vtanh.f32 %v2056_v37 }
0x169d   : > { %v4339_v39 = vpop.eup %4338 }
0x169e   : > { %v2060_v41 = vmul.f32 0.0625, %v4339_v39  ;;  %v2206_v46 = vmul.f32 2.0, %v4339_v39 }
0x16a0   : > { %v2061_v40 = vadd.f32 %v2060_v41, %v5722_v13  ;;  %v2207_v48 = vadd.f32 %v5805_v24, %v2206_v46 }
0x16a2   : > { %4087 = vmatmul.mubr.f32.vlgmr.msra.gmra.mxu1 %v2061_v40 }
0x16a3   : > { %4125 = vmatpush3.msra.mxu1 %v5617_v54  ;;  %4156 = vmatprep.mubr.msk.f32.mxu1 %vm4426_vm0, %v4425_v3 }
0x16a4   : > { %4126 = vmatprep.subr.mxu1 %v4425_v3 }
0x16a5   : > { %4127 = vmatpush3.msra.mxu1 %v5626_v55 }
0x16a6   : > { %4128 = vmatprep.subr.mxu1 %v4425_v3 }
0x16a7   : > { %4129 = vmatpush3.msra.mxu1 %v5633_v12 }
0x16a8   : > { %4130 = vmatprep.subr.mxu1 %v4425_v3 }
0x16a9   : > { %4131 = vmatpush3.msra.mxu1 %v5677_v27 }
0x16aa   : > { %4132 = vmatprep.subr.mxu1 %v4425_v3 }
0x16ab   : > { %4133 = vmatpush3.msra.mxu1 %v5684_v28 }
0x16ac   : > { %4134 = vmatprep.subr.mxu1 %v4425_v3 }
0x16ad   : > { %4135 = vmatpush3.msra.mxu1 %v5691_v29 }
0x16ae   : > { %4136 = vmatprep.subr.mxu1 %v4425_v3 }
0x16af   : > { %4137 = vmatpush3.msra.mxu1 %v5698_v30 }
0x16b0   : > { %4138 = vmatprep.subr.mxu1 %v4425_v3 }
0x16b1   : > { %4139 = vmatpush3.msra.mxu1 %v5744_v15 }
0x16b2   : > { %4140 = vmatprep.subr.mxu1 %v4425_v3 }
0x16b3   : > { %4141 = vmatpush3.msra.mxu1 %v5751_v17 }
0x16b4   : > { %4142 = vmatprep.subr.mxu1 %v4425_v3 }
0x16b5   : > { %4143 = vmatpush3.msra.mxu1 %v5758_v31 }
0x16b6   : > { %4144 = vmatprep.subr.mxu1 %v4425_v3 }
0x16b7   : > { %4145 = vmatpush3.msra.mxu1 %v5765_v32 }
0x16b8   : > { %4146 = vmatprep.subr.mxu1 %v4425_v3 }
0x16b9   : > { %4147 = vmatpush3.msra.mxu1 %v5772_v1 }
0x16ba   : > { %4148 = vmatprep.subr.mxu1 %v4425_v3 }
0x16bb   : > { %4149 = vmatpush3.msra.mxu1 %v5779_v2 }
0x16bc   : > { %4150 = vmatprep.subr.mxu1 %v4425_v3 }
0x16bd   : > { %4151 = vmatpush3.msra.mxu1 %v5786_v33 }
0x16be   : > { %4152 = vmatprep.subr.mxu1 %v4425_v3 }
0x16bf   : > { %4153 = vmatpush3.msra.mxu1 %v5793_v19 }
0x16c0   : > { %4154 = vmatprep.subr.mxu1 %v4425_v3 }
0x16c1   : > { %4155 = vmatpush3.msra.mxu1 %v5800_v20 }
0x16c2   : > { %4194 = vmatprep.subr.mxu1 %v4425_v3 }
0x1762   : > { %v2128_v42 = vpop.f32.mrf.mxu1 }
0x1763   : > { %v2129_v44 = vadd.f32 %v5880_v43, %v2128_v42 }
0x1764   : > { %v4088_v45 = vpop.f32.mrf.mxu1 }
0x1765   : > { %4340 = vtanh.f32 %v2129_v44 }
0x1772   : > { %v4341_v47 = vpop.eup %4340 }
0x1773   : > { %v2208_v49 = vmul.f32 2.0, %v4341_v47  ;;  %v2133_v50 = vmul.f32 0.125, %v4341_v47 }
0x1775   : > { %v2134_v51 = vadd.f32 %v2133_v50, %v5722_v13  ;;  %v2209_v52 = vadd.f32 %v2208_v49, %v2207_v48 }
0x1777   : > { %4122 = vmatmul.mubr.f32.vlgmr.msra.gmra.mxu0 %v2134_v51 }
0x1778   : > { %4160 = vmatpush3.msra.mxu0 %v5617_v54  ;;  %4191 = vmatprep.mubr.msk.f32.mxu0 %vm4426_vm0, %v4425_v3 }
0x1779   : > { %4161 = vmatprep.subr.mxu0 %v4425_v3 }
0x177a   : > { %4162 = vmatpush3.msra.mxu0 %v5626_v55 }
0x177b   : > { %4163 = vmatprep.subr.mxu0 %v4425_v3 }
0x177c   : > { %4164 = vmatpush3.msra.mxu0 %v5633_v12 }
0x177d   : > { %4165 = vmatprep.subr.mxu0 %v4425_v3 }
0x177e   : > { %4166 = vmatpush3.msra.mxu0 %v5677_v27 }
0x177f   : > { %4167 = vmatprep.subr.mxu0 %v4425_v3 }
0x1780   : > { %4168 = vmatpush3.msra.mxu0 %v5684_v28 }
0x1781   : > { %4169 = vmatprep.subr.mxu0 %v4425_v3 }
0x1782   : > { %4170 = vmatpush3.msra.mxu0 %v5691_v29 }
0x1783   : > { %4171 = vmatprep.subr.mxu0 %v4425_v3 }
0x1784   : > { %4172 = vmatpush3.msra.mxu0 %v5698_v30 }
0x1785   : > { %4173 = vmatprep.subr.mxu0 %v4425_v3 }
0x1786   : > { %4174 = vmatpush3.msra.mxu0 %v5744_v15 }
0x1787   : > { %4175 = vmatprep.subr.mxu0 %v4425_v3 }
0x1788   : > { %4176 = vmatpush3.msra.mxu0 %v5751_v17 }
0x1789   : > { %4177 = vmatprep.subr.mxu0 %v4425_v3 }
0x178a   : > { %4178 = vmatpush3.msra.mxu0 %v5758_v31 }
0x178b   : > { %4179 = vmatprep.subr.mxu0 %v4425_v3 }
0x178c   : > { %4180 = vmatpush3.msra.mxu0 %v5765_v32 }
0x178d   : > { %4181 = vmatprep.subr.mxu0 %v4425_v3 }
0x178e   : > { %4182 = vmatpush3.msra.mxu0 %v5772_v1 }
0x178f   : > { %4183 = vmatprep.subr.mxu0 %v4425_v3 }
0x1790   : > { %4184 = vmatpush3.msra.mxu0 %v5779_v2 }
0x1791   : > { %4185 = vmatprep.subr.mxu0 %v4425_v3 }
0x1792   : > { %4186 = vmatpush3.msra.mxu0 %v5786_v33 }
0x1793   : > { %4187 = vmatprep.subr.mxu0 %v4425_v3 }
0x1794   : > { %4188 = vmatpush3.msra.mxu0 %v5793_v19 }
0x1795   : > { %4189 = vmatprep.subr.mxu0 %v4425_v3 }
0x1796   : > { %4190 = vmatpush3.msra.mxu0 %v5800_v20 }
0x1797   : > { %4229 = vmatprep.subr.mxu0 %v4425_v3 }
0x1837   : > { %v2201_v7 = vpop.f32.mrf.mxu0 }
0x1838   : > { %v2202_v56 = vadd.f32 %v5880_v43, %v2201_v7 }
0x1839   : > { %v4123_v57 = vpop.f32.mrf.mxu0 }
0x183a   : > { %4342 = vtanh.f32 %v2202_v56 }
0x1847   : > { %v4343_v58 = vpop.eup %4342 }
0x1848   : > { %v2210_v8 = vadd.f32 %v4343_v58, %v2209_v52 }
0x184a   : > { %v2211_v10 = vmul.f32 0.020833334, %v2210_v8 }
0x184c   : > { %v5921_v53 = vadd.f32 %v2211_v10, %v5722_v13 }
0x184e   : > { %4157 = vmatmul.mubr.f32.vlgmr.msra.gmra.mxu1 %v5921_v53 }
0x184f   : > { %4195 = vmatpush3.msra.mxu1 %v5617_v54  ;;  %4226 = vmatprep.mubr.msk.f32.mxu1 %vm4426_vm0, %v4425_v3 }
0x1850   : > { %4196 = vmatprep.subr.mxu1 %v4425_v3 }
0x1851   : > { %4197 = vmatpush3.msra.mxu1 %v5626_v55 }
0x1852   : > { %4198 = vmatprep.subr.mxu1 %v4425_v3 }
0x1853   : > { %4199 = vmatpush3.msra.mxu1 %v5633_v12 }
0x1854   : > { %4200 = vmatprep.subr.mxu1 %v4425_v3 }
0x1855   : > { %4201 = vmatpush3.msra.mxu1 %v5677_v27 }
0x1856   : > { %4202 = vmatprep.subr.mxu1 %v4425_v3 }
0x1857   : > { %4203 = vmatpush3.msra.mxu1 %v5684_v28 }
0x1858   : > { %4204 = vmatprep.subr.mxu1 %v4425_v3 }
0x1859   : > { %4205 = vmatpush3.msra.mxu1 %v5691_v29 }
0x185a   : > { %4206 = vmatprep.subr.mxu1 %v4425_v3 }
0x185b   : > { %4207 = vmatpush3.msra.mxu1 %v5698_v30 }
0x185c   : > { %4208 = vmatprep.subr.mxu1 %v4425_v3 }
0x185d   : > { %4209 = vmatpush3.msra.mxu1 %v5744_v15 }
0x185e   : > { %4210 = vmatprep.subr.mxu1 %v4425_v3 }
0x185f   : > { %4211 = vmatpush3.msra.mxu1 %v5751_v17 }
0x1860   : > { %4212 = vmatprep.subr.mxu1 %v4425_v3 }
0x1861   : > { %4213 = vmatpush3.msra.mxu1 %v5758_v31 }
0x1862   : > { %4214 = vmatprep.subr.mxu1 %v4425_v3 }
0x1863   : > { %4215 = vmatpush3.msra.mxu1 %v5765_v32 }
0x1864   : > { %4216 = vmatprep.subr.mxu1 %v4425_v3 }
0x1865   : > { %4217 = vmatpush3.msra.mxu1 %v5772_v1 }
0x1866   : > { %4218 = vmatprep.subr.mxu1 %v4425_v3 }
0x1867   : > { %4219 = vmatpush3.msra.mxu1 %v5779_v2 }
0x1868   : > { %4220 = vmatprep.subr.mxu1 %v4425_v3 }
0x1869   : > { %4221 = vmatpush3.msra.mxu1 %v5786_v33 }
0x186a   : > { %4222 = vmatprep.subr.mxu1 %v4425_v3 }
0x186b   : > { %4223 = vmatpush3.msra.mxu1 %v5793_v19 }
0x186c   : > { %4224 = vmatprep.subr.mxu1 %v4425_v3 }
0x186d   : > { %4225 = vmatpush3.msra.mxu1 %v5800_v20 }
0x190e   : > { %v2279_v61 = vpop.f32.mrf.mxu1 }
0x190f   : > { %v2280_v62 = vadd.f32 %v5880_v43, %v2279_v61 }
0x1910   : > { %v4158_v63 = vpop.f32.mrf.mxu1 }
0x1911   : > { %4344 = vtanh.f32 %v2280_v62 }
0x191e   : > { %v4345_v0 = vpop.eup %4344 }
0x191f   : > { %v2284_v14 = vmul.f32 0.0625, %v4345_v0 }
0x1921   : > { %v2285_v16 = vadd.f32 %v2284_v14, %v5921_v53 }
0x1923   : > { %4192 = vmatmul.mubr.f32.vlgmr.msra.gmra.mxu0 %v2285_v16 }
0x1924   : > { %4230 = vmatpush3.msra.mxu0 %v5617_v54  ;;  %4261 = vmatprep.mubr.msk.f32.mxu0 %vm4426_vm0, %v4425_v3 }
0x1925   : > { %4231 = vmatprep.subr.mxu0 %v4425_v3 }
0x1926   : > { %4232 = vmatpush3.msra.mxu0 %v5626_v55 }
0x1927   : > { %4233 = vmatprep.subr.mxu0 %v4425_v3 }
0x1928   : > { %4234 = vmatpush3.msra.mxu0 %v5633_v12 }
0x1929   : > { %4235 = vmatprep.subr.mxu0 %v4425_v3 }
0x192a   : > { %4236 = vmatpush3.msra.mxu0 %v5677_v27 }
0x192b   : > { %4237 = vmatprep.subr.mxu0 %v4425_v3 }
0x192c   : > { %4238 = vmatpush3.msra.mxu0 %v5684_v28 }
0x192d   : > { %4239 = vmatprep.subr.mxu0 %v4425_v3 }
0x192e   : > { %4240 = vmatpush3.msra.mxu0 %v5691_v29 }
0x192f   : > { %4241 = vmatprep.subr.mxu0 %v4425_v3 }
0x1930   : > { %4242 = vmatpush3.msra.mxu0 %v5698_v30 }
0x1931   : > { %4243 = vmatprep.subr.mxu0 %v4425_v3 }
0x1932   : > { %4244 = vmatpush3.msra.mxu0 %v5744_v15 }
0x1933   : > { %4245 = vmatprep.subr.mxu0 %v4425_v3 }
0x1934   : > { %4246 = vmatpush3.msra.mxu0 %v5751_v17 }
0x1935   : > { %4247 = vmatprep.subr.mxu0 %v4425_v3 }
0x1936   : > { %4248 = vmatpush3.msra.mxu0 %v5758_v31 }
0x1937   : > { %4249 = vmatprep.subr.mxu0 %v4425_v3 }
0x1938   : > { %4250 = vmatpush3.msra.mxu0 %v5765_v32 }
0x1939   : > { %4251 = vmatprep.subr.mxu0 %v4425_v3 }
0x193a   : > { %4252 = vmatpush3.msra.mxu0 %v5772_v1 }
0x193b   : > { %4253 = vmatprep.subr.mxu0 %v4425_v3 }
0x193c   : > { %4254 = vmatpush3.msra.mxu0 %v5779_v2 }
0x193d   : > { %4255 = vmatprep.subr.mxu0 %v4425_v3 }
0x193e   : > { %4256 = vmatpush3.msra.mxu0 %v5786_v33 }
0x193f   : > { %4257 = vmatprep.subr.mxu0 %v4425_v3 }
0x1940   : > { %4258 = vmatpush3.msra.mxu0 %v5793_v19 }
0x1941   : > { %4259 = vmatprep.subr.mxu0 %v4425_v3 }
0x1942   : > { %4260 = vmatpush3.msra.mxu0 %v5800_v20 }
0x19e3   : > { %v2352_v54 = vpop.f32.mrf.mxu0 }
0x19e4   : > { %v2353_v55 = vadd.f32 %v5880_v43, %v2352_v54 }
0x19e5   : > { %v4193_v12 = vpop.f32.mrf.mxu0 }
0x19e6   : > { %4346 = vtanh.f32 %v2353_v55 }
0x19f3   : > { %v4347_v18 = vpop.eup %4346 }
0x19f4   : > { %v2357_v59 = vmul.f32 0.0625, %v4347_v18  ;;  %v2503_v29 = vmul.f32 2.0, %v4347_v18 }
0x19f6   : > { %v2358_v60 = vadd.f32 %v2357_v59, %v5921_v53  ;;  %v2504_v30 = vadd.f32 %v4345_v0, %v2503_v29 }
0x19f8   : > { %4227 = vmatmul.mubr.f32.vlgmr.msra.gmra.mxu1 %v2358_v60 }
0x1ab8   : > { %v2425_v26 = vpop.f32.mrf.mxu1 }
0x1ab9   : > { %v2426_v27 = vadd.f32 %v5880_v43, %v2425_v26 }
0x1aba   : > { %v4228_v28 = vpop.f32.mrf.mxu1 }
0x1abb   : > { %4348 = vtanh.f32 %v2426_v27 }
0x1ac8   : > { %v4349_v3 = vpop.eup %4348 }
0x1ac9   : > { %v2505_v34 = vmul.f32 2.0, %v4349_v3  ;;  %v2430_v4 = vmul.f32 0.125, %v4349_v3 }
0x1acb   : > { %v2431_v5 = vadd.f32 %v2430_v4, %v5921_v53  ;;  %v2506_v6 = vadd.f32 %v2505_v34, %v2504_v30 }
0x1acd   : > { %4262 = vmatmul.mubr.f32.vlgmr.msra.gmra.mxu0 %v2431_v5 }
0x1b8d   : > { %v2498_v9 = vpop.f32.mrf.mxu0 }
0x1b8e   : > { %v2499_v11 = vadd.f32 %v5880_v43, %v2498_v9 }
0x1b8f   : > { %v4263_v13 = vpop.f32.mrf.mxu0 }
0x1b90   : > { %4350 = vtanh.f32 %v2499_v11 }
0x1b9d   : > { %v4351_v15 = vpop.eup %4350 }
0x1b9e   : > { %v2507_v17 = vadd.f32 %v4351_v15, %v2506_v6 }
0x1ba0   : > { %v2508_v31 = vmul.f32 0.020833334, %v2507_v17  ;;  %23 = sbr.rel (!%p21_p0) target bundleno = 2 (0x2), region = 46 }
0x1ba2   : > { %v2509_v1 = vadd.f32 %v2508_v31, %v5921_v53  }
0x1ba4   : > { %2547 = vst [vmem:[%s2535_s10 + $0x8] sm:$0xff] %v2509_v1 }
0x1ba5   :  { %4397 = shalt.err (!%p4394_p5)
}
0x1ba6   :  { %s4428_s30 = smov 128   ;;  %s4429_s8 = smov 8  }
0x1ba7   :  { %2525 = dma.vmem_to_hbm [thread:$0]  %s2520_s6, 1152, %s6011_s4, [#allocation3], %s4428_s30, %s4428_s30, %s4429_s8  }
0x1ba8   :  { %4414 = dma.done.wait [#allocation3], 1152  }
0x1ba9   :  { %4415 = vsyncadd [#allocation3], 4294966144 }
0x1baa   :  { %2529 = vsyncpa [#allocation3], 1 }

</bundles_post_ra>
